<compile_context>
chip_gen: v7x
topology: tpu7x:2x2x1
jax: 0.10.0
libtpu: 0.0.40
codegen_flags: <defaults>
</compile_context>

<pallas_src>
import functools
import numpy as np
import jax
import jax.numpy as jnp
from jax import lax
from jax.experimental import pallas as pl
from jax.experimental.pallas import tpu as pltpu

EPS = 1e-5                       # torch LayerNorm / GroupNorm default eps
_BN = 256                        # max node-block rows per grid step
_VMEM_LIMIT = 32 * 1024 * 1024   # scoped-VMEM budget (safe on v5e/v6e/v7x)


def _round_up(n, m):
    return ((n + m - 1) // m) * m


def _pick_bn(n):
    # biggest block that is a sublane multiple, capped at _BN (256 is a
    # multiple of 128, so large-N blocks map cleanly onto v5e's 128-row MXU).
    return min(_BN, _round_up(max(n, 1), 8))


# ----------------------------------------------------------------------------
# Pallas kernels
# ----------------------------------------------------------------------------
def _ln_steps(h, g, b):
    """LayerNorm over (steps, feat) per node for a (L, bn, D) tile.

    g/b arrive pre-shaped (L, 1, D).  Single-axis reductions only (leading dim
    then lane dim) to stay on well-supported lowering paths.
    """
    cnt = h.shape[0] * h.shape[2]
    s = jnp.sum(h, axis=0, keepdims=True)                      # (1, bn, D)
    mu = jnp.sum(s, axis=-1, keepdims=True) / cnt              # (1, bn, 1)
    d = h - mu
    s2 = jnp.sum(d * d, axis=0, keepdims=True)
    var = jnp.sum(s2, axis=-1, keepdims=True) / cnt
    return d * lax.rsqrt(var + EPS) * g + b


def _ln_last(h, g, b):
    """Per-row normalization over the last axis, affine (1, D)."""
    mu = jnp.mean(h, axis=-1, keepdims=True)
    var = jnp.mean((h - mu) ** 2, axis=-1, keepdims=True)
    return (h - mu) * lax.rsqrt(var + EPS) * g + b


def _linear_res_ln_kernel(has_transform, pool_concat, *refs):
    """LinearRes with norm='ln' (LayerNorm over [n_l, n_out]) on (L, bn, Din).

    Matmuls run on the flattened (L*bn, Din) layout (single large-M MXU pass);
    LayerNorm stats are taken on the (L, bn, D) view.  With pool_concat, the
    lane-encoder MaxPool1d over L + concat is fused into the output.
    """
    if has_transform:
        x_ref, w1, g1, b1, w2, g2, b2, wt, gt, bt, o_ref = refs
    else:
        x_ref, w1, g1, b1, w2, g2, b2, o_ref = refs
    x = x_ref[...]                                             # (L, bn, Din)
    L, bn, Din = x.shape
    Dout = w1.shape[1]
    xf = x.reshape(L * bn, Din)                                # layout-free merge

    h = jnp.dot(xf, w1[...], preferred_element_type=jnp.float32)
    h = jnp.maximum(_ln_steps(h.reshape(L, bn, Dout), g1[...], b1[...]), 0.0)
    h = jnp.dot(h.reshape(L * bn, Dout), w2[...],
                preferred_element_type=jnp.float32)
    h = _ln_steps(h.reshape(L, bn, Dout), g2[...], b2[...])
    if has_transform:
        s = jnp.dot(xf, wt[...], preferred_element_type=jnp.float32)
        s = _ln_steps(s.reshape(L, bn, Dout), gt[...], bt[...])
    else:
        s = x
    out = jnp.maximum(h + s, 0.0)                              # (L, bn, Dout)
    if pool_concat:
        g = jnp.max(out, axis=0, keepdims=True)                # MaxPool1d(k=L)
        out = jnp.concatenate([out, jnp.broadcast_to(g, out.shape)], axis=-1)
    o_ref[...] = out


def _linear_res_gn_kernel(has_transform, *refs):
    """LinearRes with norm='gn' (GroupNorm(1, D)) on 2-D input (bn, Din)."""
    if has_transform:
        x_ref, w1, g1, b1, w2, g2, b2, wt, gt, bt, o_ref = refs
    else:
        x_ref, w1, g1, b1, w2, g2, b2, o_ref = refs
    x = x_ref[...]                                             # (bn, Din)
    h = jnp.dot(x, w1[...], preferred_element_type=jnp.float32)
    h = jnp.maximum(_ln_last(h, g1[...], b1[...]), 0.0)
    h = jnp.dot(h, w2[...], preferred_element_type=jnp.float32)
    h = _ln_last(h, g2[...], b2[...])
    if has_transform:
        s = _ln_last(jnp.dot(x, wt[...], preferred_element_type=jnp.float32),
                     gt[...], bt[...])
    else:
        s = x
    o_ref[...] = jnp.maximum(h + s, 0.0)


def _lstm_kernel(x_ref, wih_ref, whh_ref, b_ref, o_ref, gx_ref):
    """Full LSTM over T steps for one node block; returns final hidden state.

    Input projection (x @ W_ih + b) is computed once for all T steps as a
    single (T*bn, D) @ (D, 4D) matmul and staged into the gx_ref VMEM scratch;
    the serial fori_loop only does h @ W_hh + elementwise gate math.
    h0/c0 of the reference module are zeros.
    """
    T, bn, D = x_ref.shape
    wih = wih_ref[...]
    whh = whh_ref[...]
    b = b_ref[...]

    xf = x_ref[...].reshape(T * bn, D)                         # layout-free merge
    gx = jnp.dot(xf, wih, preferred_element_type=jnp.float32) + b
    gx_ref[...] = gx.reshape(T, bn, 4 * D)

    def step(t, carry):
        h, c = carry
        gates = gx_ref[t] + jnp.dot(h, whh, preferred_element_type=jnp.float32)
        # nonlinearities on the full 4D-lane vreg, then static gate slices
        sg = jax.nn.sigmoid(gates)
        th = jnp.tanh(gates)
        i = sg[:, 0 * D:1 * D]
        f = sg[:, 1 * D:2 * D]
        g = th[:, 2 * D:3 * D]
        o = sg[:, 3 * D:4 * D]
        c = f * c + i * g
        h = o * jnp.tanh(c)
        return (h, c)

    h0 = jnp.zeros((bn, D), jnp.float32)
    c0 = jnp.zeros((bn, D), jnp.float32)
    h, _ = lax.fori_loop(0, T, step, (h0, c0))
    o_ref[...] = h.astype(o_ref.dtype)


def _interaction_kernel(n_head, scale,
                        lens_ref, nodes_ref,
                        wq_ref, gq_ref, bq_ref,
                        wk_ref, gk_ref, bk_ref,
                        wv_ref, gv_ref, bv_ref,
                        wo1_ref, go1_ref, bo1_ref, wo2_ref,
                        wl1_ref, gln_ref, bln_ref, wl2_ref,
                        o_ref):
    """InteractionEncoder for one (padded) scene: nodes (Mp, D) -> (Mp, D).

    Q/K/V projections are single wide (Mp, D) @ (D, H*D) matmuls followed by
    a last-axis LayerNorm on the (Mp, H*D) layout (matches Linear+LN(H*D)).
    Attention itself is block-diagonal per head, so heads are handled with a
    static-unrolled loop of 2-D matmuls over 32-lane slices.  Per-scene valid
    length comes from SMEM (scalar prefetch); padded KEY columns are masked
    before softmax.  Padded QUERY rows still flow through (results discarded
    by the wrapper) -- wasted work, not a correctness issue.
    """
    x = nodes_ref[...]                                         # (Mp, D)
    Mp, D = x.shape
    m_valid = lens_ref[pl.program_id(0)]

    # custom `Linear`: nn.Linear(bias=False) + LayerNorm(H*D) (+ ReLU for v)
    q = _ln_last(jnp.dot(x, wq_ref[...], preferred_element_type=jnp.float32),
                 gq_ref[...], bq_ref[...])                     # (Mp, H*D)
    k = _ln_last(jnp.dot(x, wk_ref[...], preferred_element_type=jnp.float32),
                 gk_ref[...], bk_ref[...])
    v = jnp.maximum(
        _ln_last(jnp.dot(x, wv_ref[...], preferred_element_type=jnp.float32),
                 gv_ref[...], bv_ref[...]), 0.0)

    # all-pairs attention inside the scene; per-row softmax is mathematically
    # identical to the reference's single global-max subtraction.
    # TODO(synk): for very large scenes (Mp >~ 1k) tile the softmax over query
    # rows (flash-style) to bound the (Mp, Mp) working set under v7x's 64 MiB.
    col = lax.broadcasted_iota(jnp.int32, (Mp, Mp), 1)
    key_mask = col < m_valid
    head_outs = []
    for hh in range(n_head):
        sl = slice(hh * D, (hh + 1) * D)
        s = jnp.dot(q[:, sl], k[:, sl].T,
                    preferred_element_type=jnp.float32) * scale
        s = jnp.where(key_mask, s, -1e30)
        s = s - jnp.max(s, axis=-1, keepdims=True)
        e = jnp.exp(s)
        att = e / jnp.sum(e, axis=-1, keepdims=True)
        head_outs.append(jnp.dot(att, v[:, sl],
                                 preferred_element_type=jnp.float32))
    out_flat = jnp.concatenate(head_outs, axis=-1)             # (Mp, H*D)

    # to_out: Linear(H*D, D) (+LN+ReLU) then nn.Linear(D, D, bias=False)
    y = jnp.dot(out_flat, wo1_ref[...], preferred_element_type=jnp.float32)
    y = jnp.maximum(_ln_last(y, go1_ref[...], bo1_ref[...]), 0.0)
    y = jnp.dot(y, wo2_ref[...], preferred_element_type=jnp.float32)

    n1 = jnp.dot(x, wl1_ref[...], preferred_element_type=jnp.float32)
    z = jnp.maximum(_ln_last(n1 + y, gln_ref[...], bln_ref[...]), 0.0)
    z = jnp.dot(z, wl2_ref[...], preferred_element_type=jnp.float32)
    o_ref[...] = jnp.maximum(z + x, 0.0).astype(o_ref.dtype)


# ----------------------------------------------------------------------------
# Pallas-call wrappers
# ----------------------------------------------------------------------------
def linear_res_ln(x_lnd, p, pool_concat=False):
    """x_lnd: (L, N, Din) float32 -> (L, N, Dout) (or (L, N, 2*Dout))."""
    L, N, Din = x_lnd.shape
    bn = _pick_bn(N)
    Dout = p['w1'].shape[1]
    Do = 2 * Dout if pool_concat else Dout
    has_t = 'wt' in p
    ins = [x_lnd, p['w1'], p['g1'][:, None, :], p['b1'][:, None, :],
           p['w2'], p['g2'][:, None, :], p['b2'][:, None, :]]
    if has_t:
        ins += [p['wt'], p['gt'][:, None, :], p['bt'][:, None, :]]
    in_specs = [pl.BlockSpec((L, bn, Din), lambda i: (0, i, 0))]
    in_specs += [pl.BlockSpec(a.shape, lambda i, nd=a.ndim: (0,) * nd)
                 for a in ins[1:]]
    return pl.pallas_call(
        functools.partial(_linear_res_ln_kernel, has_t, pool_concat),
        out_shape=jax.ShapeDtypeStruct((L, N, Do), jnp.float32),
        grid=(pl.cdiv(N, bn),),
        in_specs=in_specs,
        out_specs=pl.BlockSpec((L, bn, Do), lambda i: (0, i, 0)),
        compiler_params=pltpu.CompilerParams(
            dimension_semantics=("parallel",),
            vmem_limit_bytes=_VMEM_LIMIT),
    )(*ins)


def linear_res_gn(x, p):
    """x: (N, Din) float32 -> (N, Dout)."""
    N, Din = x.shape
    bn = _pick_bn(N)
    Dout = p['w1'].shape[1]
    has_t = 'wt' in p
    ins = [x, p['w1'], p['g1'], p['b1'], p['w2'], p['g2'], p['b2']]
    if has_t:
        ins += [p['wt'], p['gt'], p['bt']]
    in_specs = [pl.BlockSpec((bn, Din), lambda i: (i, 0))]
    in_specs += [pl.BlockSpec(a.shape, lambda i, nd=a.ndim: (0,) * nd)
                 for a in ins[1:]]
    return pl.pallas_call(
        functools.partial(_linear_res_gn_kernel, has_t),
        out_shape=jax.ShapeDtypeStruct((N, Dout), jnp.float32),
        grid=(pl.cdiv(N, bn),),
        in_specs=in_specs,
        out_specs=pl.BlockSpec((bn, Dout), lambda i: (i, 0)),
        compiler_params=pltpu.CompilerParams(
            dimension_semantics=("parallel",),
            vmem_limit_bytes=_VMEM_LIMIT),
    )(*ins)


def lstm_final_h(x_tnd, wih, whh, b):
    """x_tnd: (T, N, D) float32 -> final hidden state (N, D)."""
    T, N, D = x_tnd.shape
    bn = _pick_bn(N)
    return pl.pallas_call(
        _lstm_kernel,
        out_shape=jax.ShapeDtypeStruct((N, D), jnp.float32),
        grid=(pl.cdiv(N, bn),),
        in_specs=[pl.BlockSpec((T, bn, D), lambda n: (0, n, 0)),
                  pl.BlockSpec(wih.shape, lambda n: (0, 0)),
                  pl.BlockSpec(whh.shape, lambda n: (0, 0)),
                  pl.BlockSpec(b.shape, lambda n: (0, 0))],
        out_specs=pl.BlockSpec((bn, D), lambda n: (n, 0)),
        scratch_shapes=[pltpu.VMEM((T, bn, 4 * D), jnp.float32)],
        compiler_params=pltpu.CompilerParams(
            dimension_semantics=("parallel",),
            vmem_limit_bytes=_VMEM_LIMIT),
    )(x_tnd, wih, whh, b)


# ----------------------------------------------------------------------------
# Model glue (gathers, encoders, forward) -- plain JAX / numpy bookkeeping
# ----------------------------------------------------------------------------
def agent_gather(trajs_obs, pad_obs):
    agents_list = []
    for traj, pad in zip(trajs_obs, pad_obs):
        xy = traj[:, :, :2]
        feats = jnp.concatenate(
            [jnp.zeros_like(xy[:, :1, :]), xy[:, 1:, :] - xy[:, :-1, :]], axis=1)
        agents_list.append(jnp.concatenate([xy, feats, pad[:, :, None]], axis=-1))
    agents = jnp.concatenate(agents_list, axis=0)              # (Na, 20, 5)
    fp = agents[:, :, :-1] * agents[:, :, -1:]
    fp = fp.at[:, 1:, :].multiply(agents[:, :-1, -1:])
    agents = jnp.concatenate([fp, agents[:, :, -1:]], axis=-1)
    agent_ids, count = [], 0
    for traj in trajs_obs:
        agent_ids.append(np.arange(count, count + traj.shape[0]))
        count += traj.shape[0]
    agent_ctrs = [agents[ids, -1, :2] for ids in agent_ids]
    return agents, agent_ids, agent_ctrs


def graph_gather(graphs):
    lane_ids, count = [], 0
    for g in graphs:
        lane_ids.append(np.arange(count, count + g['num_nodes']))
        count += g['num_nodes']
    lanes = jnp.concatenate([g['feats'] for g in graphs], axis=0)
    lane_ctrs = jnp.concatenate([g['ctrs'] for g in graphs], axis=0)
    turn = jnp.concatenate([g['turn'] for g in graphs], 0).astype(jnp.float32)
    control = jnp.concatenate([g['control'] for g in graphs], 0).astype(jnp.float32)
    intersect = jnp.concatenate([g['intersect'] for g in graphs], 0).astype(jnp.float32)
    lane_seg = jnp.concatenate([turn, control[:, None], intersect[:, None]], axis=-1)
    return lanes, lane_ids, lane_ctrs, lane_seg


def agent_encoder(agents, p):
    x = jnp.transpose(agents, (1, 0, 2))                       # (T=20, Na, F)
    for lp in p['backbone']:
        x = linear_res_ln(x, lp)                               # (20, Na, hidden)
    return lstm_final_h(x, p['wih'], p['whh'], p['b'])         # (Na, D)


def lane_encoder(lanes, lane_seg, p):
    x = jnp.transpose(lanes, (1, 0, 2))                        # (L=10, Nl, F)
    for lp in p['backbone']:
        # MaxPool1d(k=10) + concat fused into the LinearRes kernel output
        x = linear_res_ln(x, lp, pool_concat=True)             # (10, Nl, 2*hidden)
    x = jnp.max(x, axis=0)                                     # final MaxPool1d
    seg = linear_res_gn(lane_seg, p['seg'])
    return linear_res_gn(x + seg, p['fuse'])


def interaction_encoder(agents_enc, lanes_enc, agent_ids, lane_ids, p):
    """Single fused pallas_call over all scenes (grid over scenes)."""
    D = agents_enc.shape[-1]
    H = 6
    scale = float(D) ** (-0.5)                                 # matches reference
    B = len(agent_ids)
    Na = int(agents_enc.shape[0])
    Ms = [len(a) + len(l) for a, l in zip(agent_ids, lane_ids)]
    Mp = _round_up(max(Ms), 8)

    # single-gather scene packing: (B, Mp) index matrix built on host
    idx = np.zeros((B, Mp), dtype=np.int32)
    for i, (a_ids, l_ids) in enumerate(zip(agent_ids, lane_ids)):
        ids = np.concatenate([np.asarray(a_ids), Na + np.asarray(l_ids)])
        idx[i, :ids.shape[0]] = ids
    all_nodes = jnp.concatenate([agents_enc, lanes_enc], axis=0)   # (Na+Nl, D)
    nodes = all_nodes[jnp.asarray(idx)]                            # (B, Mp, D)
    lengths = jnp.asarray(Ms, dtype=jnp.int32)                     # (B,)

    weights = (p['wq'], p['gq'], p['bq'],
               p['wk'], p['gk'], p['bk'],
               p['wv'], p['gv'], p['bv'],
               p['wo1'], p['go1'], p['bo1'], p['wo2'],
               p['wl1'], p['gln'], p['bln'], p['wl2'])

    in_specs = [pl.BlockSpec((None, Mp, D), lambda b, lens: (b, 0, 0))]
    in_specs += [pl.BlockSpec(w.shape, lambda b, lens, nd=w.ndim: (0,) * nd)
                 for w in weights]

    out = pl.pallas_call(
        functools.partial(_interaction_kernel, H, scale),
        out_shape=jax.ShapeDtypeStruct((B, Mp, D), jnp.float32),
        grid_spec=pltpu.PrefetchScalarGridSpec(
            num_scalar_prefetch=1, grid=(B,),
            in_specs=in_specs,
            out_specs=pl.BlockSpec((None, Mp, D), lambda b, lens: (b, 0, 0))),
        compiler_params=pltpu.CompilerParams(
            dimension_semantics=("parallel",),
            vmem_limit_bytes=_VMEM_LIMIT),
    )(lengths, nodes, *weights)

    # keep agent rows of each scene (agents were placed first per scene)
    outs = [out[i, :len(a_ids)] for i, a_ids in enumerate(agent_ids)]
    return jnp.concatenate(outs, axis=0)


def mhlv_forward(data, params):
    agents, agent_ids, agent_ctrs = agent_gather(data['trajs_obs'], data['pad_obs'])
    lanes, lane_ids, lane_ctrs, lane_seg = graph_gather(data['graph'])
    agents_enc = agent_encoder(agents, params['agent'])
    lanes_enc = lane_encoder(lanes, lane_seg, params['lane'])
    agents_int = interaction_encoder(agents_enc, lanes_enc, agent_ids, lane_ids,
                                     params['inter'])
    # TODO(synk): Decoder(n_out, num_mode, pred_len) class is not provided in the
    # reference source; returning interaction-encoded agent features + centers.
    return {'agent_feats': agents_int, 'agent_ctrs': agent_ctrs}


# ----------------------------------------------------------------------------
# Deterministic parameter initialization (shapes follow the module __init__)
# ----------------------------------------------------------------------------
def _dense(key, n_in, n_out):
    bound = 1.0 / np.sqrt(n_in)
    # stored already transposed (n_in, n_out) so kernels compute x @ W
    return jax.random.uniform(key, (n_in, n_out), jnp.float32, -bound, bound)


def _init_linear_res_ln(key, n_in, n_out, n_l):
    k = jax.random.split(key, 3)
    p = {'w1': _dense(k[0], n_in, n_out),
         'g1': jnp.ones((n_l, n_out), jnp.float32),
         'b1': jnp.zeros((n_l, n_out), jnp.float32),
         'w2': _dense(k[1], n_out, n_out),
         'g2': jnp.ones((n_l, n_out), jnp.float32),
         'b2': jnp.zeros((n_l, n_out), jnp.float32)}
    if n_in != n_out:
        p.update({'wt': _dense(k[2], n_in, n_out),
                  'gt': jnp.ones((n_l, n_out), jnp.float32),
                  'bt': jnp.zeros((n_l, n_out), jnp.float32)})
    return p


def _init_linear_res_gn(key, n_in, n_out):
    k = jax.random.split(key, 3)
    p = {'w1': _dense(k[0], n_in, n_out),
         'g1': jnp.ones((1, n_out), jnp.float32),
         'b1': jnp.zeros((1, n_out), jnp.float32),
         'w2': _dense(k[1], n_out, n_out),
         'g2': jnp.ones((1, n_out), jnp.float32),
         'b2': jnp.zeros((1, n_out), jnp.float32)}
    if n_in != n_out:
        p.update({'wt': _dense(k[2], n_in, n_out),
                  'gt': jnp.ones((1, n_out), jnp.float32),
                  'bt': jnp.zeros((1, n_out), jnp.float32)})
    return p


def build_params(key, cfg):
    n_agt, n_lane, n_out = cfg['n_agent'], cfg['n_lane'], cfg['n_feature']
    n_al, n_ll = cfg['n_agent_layer'], cfg['n_lane_layer']
    keys = jax.random.split(key, 32)
    ki = iter(keys)

    # AgentEncoder
    a_backbone, in_dim = [], n_agt
    for i in range(n_al):
        hidden = n_out // 2 ** (n_al - i - 1)
        a_backbone.append(_init_linear_res_ln(next(ki), in_dim, hidden, 20))
        in_dim = hidden
    bound = 1.0 / np.sqrt(n_out)
    b_ih = jax.random.uniform(next(ki), (4 * n_out,), jnp.float32, -bound, bound)
    b_hh = jax.random.uniform(next(ki), (4 * n_out,), jnp.float32, -bound, bound)
    agent_p = {'backbone': a_backbone,
               'wih': _dense(next(ki), n_out, 4 * n_out),
               'whh': _dense(next(ki), n_out, 4 * n_out),
               'b': (b_ih + b_hh).reshape(1, 4 * n_out)}

    # LaneEncoder
    l_backbone, in_dim = [], n_lane
    for i in range(n_ll):
        hidden = n_out // 2 ** (n_ll - i)
        l_backbone.append(_init_linear_res_ln(next(ki), in_dim, hidden, 10))
        in_dim = hidden + hidden
    lane_p = {'backbone': l_backbone,
              'seg': _init_linear_res_gn(next(ki), n_lane * 2, n_out),
              'fuse': _init_linear_res_gn(next(ki), n_out, n_out)}

    # InteractionEncoder (n_head = 6; custom `Linear` = linear+LayerNorm(+ReLU))
    H, D = 6, n_out
    inter_p = {
        'wq': _dense(next(ki), D, H * D),
        'gq': jnp.ones((1, H * D), jnp.float32), 'bq': jnp.zeros((1, H * D), jnp.float32),
        'wk': _dense(next(ki), D, H * D),
        'gk': jnp.ones((1, H * D), jnp.float32), 'bk': jnp.zeros((1, H * D), jnp.float32),
        'wv': _dense(next(ki), D, H * D),
        'gv': jnp.ones((1, H * D), jnp.float32), 'bv': jnp.zeros((1, H * D), jnp.float32),
        'wo1': _dense(next(ki), H * D, D),
        'go1': jnp.ones((1, D), jnp.float32), 'bo1': jnp.zeros((1, D), jnp.float32),
        'wo2': _dense(next(ki), D, D),
        'wl1': _dense(next(ki), D, D),
        'gln': jnp.ones((1, D), jnp.float32), 'bln': jnp.zeros((1, D), jnp.float32),
        'wl2': _dense(next(ki), D, D),
    }
    return {'agent': agent_p, 'lane': lane_p, 'inter': inter_p}


# ----------------------------------------------------------------------------
# Example run
# ----------------------------------------------------------------------------
if __name__ == "__main__":
    cfg = dict(n_agent=5, n_lane=2, n_feature=32,
               n_agent_layer=2, n_lane_layer=2, num_mode=6, pred_len=30)
    key = jax.random.PRNGKey(0)
    kp, kd = jax.random.split(key)
    params = build_params(kp, cfg)

    # synthetic batch: 2 scenes, [2, 3] agents, [4, 3] lane nodes
    dkeys = jax.random.split(kd, 16)
    num_agents, num_lanes, T, L = [2, 3], [4, 3], 20, 10
    trajs_obs, pad_obs, graphs = [], [], []
    for i in range(2):
        trajs_obs.append(jax.random.normal(dkeys[i], (num_agents[i], T, 2), jnp.float32))
        pad_obs.append((jax.random.uniform(dkeys[2 + i], (num_agents[i], T)) > 0.2)
                       .astype(jnp.float32))
        graphs.append({
            'num_nodes': num_lanes[i],
            'feats': jax.random.normal(dkeys[4 + i], (num_lanes[i], L, 2), jnp.float32),
            'ctrs': jax.random.normal(dkeys[6 + i], (num_lanes[i], 2), jnp.float32),
            'turn': (jax.random.uniform(dkeys[8 + i], (num_lanes[i], 2)) > 0.5)
                    .astype(jnp.float32),
            'control': (jax.random.uniform(dkeys[10 + i], (num_lanes[i],)) > 0.5)
                       .astype(jnp.float32),
            'intersect': (jax.random.uniform(dkeys[12 + i], (num_lanes[i],)) > 0.5)
                         .astype(jnp.float32),
        })
    data = {'trajs_obs': trajs_obs, 'pad_obs': pad_obs, 'graph': graphs}

    out = mhlv_forward(data, params)
    feats = jax.block_until_ready(out['agent_feats'])
    assert feats.shape == (sum(num_agents), cfg['n_feature'])
    assert bool(jnp.all(jnp.isfinite(feats)))
    print("KERNEL_OK")
</pallas_src>

<mosaic_0001>
module attributes {stable_mosaic.version = 11 : i64} {
  func.func @_linear_res_ln_kernel(%arg0: i32, %arg1: memref<20x8x5xf32, #tpu.memory_space<vmem>>, %arg2: memref<5x16xf32, #tpu.memory_space<vmem>>, %arg3: memref<20x1x16xf32, #tpu.memory_space<vmem>>, %arg4: memref<20x1x16xf32, #tpu.memory_space<vmem>>, %arg5: memref<16x16xf32, #tpu.memory_space<vmem>>, %arg6: memref<20x1x16xf32, #tpu.memory_space<vmem>>, %arg7: memref<20x1x16xf32, #tpu.memory_space<vmem>>, %arg8: memref<5x16xf32, #tpu.memory_space<vmem>>, %arg9: memref<20x1x16xf32, #tpu.memory_space<vmem>>, %arg10: memref<20x1x16xf32, #tpu.memory_space<vmem>>, %arg11: memref<20x8x16xf32, #tpu.memory_space<vmem>>) attributes {dimension_semantics = [#tpu.dimension_semantics<parallel>], iteration_bounds = array<i64: 1>, scalar_prefetch = 0 : i64, scratch_operands = 0 : i64, tpu.core_type = #tpu.core_type<tc>, window_params = [{transform_indices = @transform_0, window_bounds = array<i64: 20, 8, 5>}, {pipeline_mode = #tpu.pipeline_mode<synchronous>, transform_indices = @transform_1, window_bounds = array<i64: 5, 16>}, {pipeline_mode = #tpu.pipeline_mode<synchronous>, transform_indices = @transform_2, window_bounds = array<i64: 20, 1, 16>}, {pipeline_mode = #tpu.pipeline_mode<synchronous>, transform_indices = @transform_3, window_bounds = array<i64: 20, 1, 16>}, {pipeline_mode = #tpu.pipeline_mode<synchronous>, transform_indices = @transform_4, window_bounds = array<i64: 16, 16>}, {pipeline_mode = #tpu.pipeline_mode<synchronous>, transform_indices = @transform_5, window_bounds = array<i64: 20, 1, 16>}, {pipeline_mode = #tpu.pipeline_mode<synchronous>, transform_indices = @transform_6, window_bounds = array<i64: 20, 1, 16>}, {pipeline_mode = #tpu.pipeline_mode<synchronous>, transform_indices = @transform_7, window_bounds = array<i64: 5, 16>}, {pipeline_mode = #tpu.pipeline_mode<synchronous>, transform_indices = @transform_8, window_bounds = array<i64: 20, 1, 16>}, {pipeline_mode = #tpu.pipeline_mode<synchronous>, transform_indices = @transform_9, window_bounds = array<i64: 20, 1, 16>}, {transform_indices = @transform_10, window_bounds = array<i64: 20, 8, 16>}]} {
    %c0 = arith.constant 0 : index
    %c0_0 = arith.constant 0 : index
    %c0_1 = arith.constant 0 : index
    %0 = vector.load %arg1[%c0, %c0_0, %c0_1] : memref<20x8x5xf32, #tpu.memory_space<vmem>>, vector<20x8x5xf32>
    %1 = vector.shape_cast %0 : vector<20x8x5xf32> to vector<160x5xf32>
    %c0_2 = arith.constant 0 : index
    %c0_3 = arith.constant 0 : index
    %2 = vector.load %arg2[%c0_2, %c0_3] : memref<5x16xf32, #tpu.memory_space<vmem>>, vector<5x16xf32>
    %cst = arith.constant dense<0.000000e+00> : vector<160x16xf32>
    %3 = tpu.matmul %1, %2, %cst {dimension_numbers = #tpu.dot_dimension_numbers<[1], [0], [0], [1], [0, 0, 1, 1], [], []>} : vector<160x5xf32>, vector<5x16xf32>, vector<160x16xf32> -> vector<160x16xf32>
    %4 = vector.shape_cast %3 : vector<160x16xf32> to vector<20x8x16xf32>
    %c0_4 = arith.constant 0 : index
    %c0_5 = arith.constant 0 : index
    %c0_6 = arith.constant 0 : index
    %5 = vector.load %arg3[%c0_4, %c0_5, %c0_6] : memref<20x1x16xf32, #tpu.memory_space<vmem>>, vector<20x1x16xf32>
    %c0_7 = arith.constant 0 : index
    %c0_8 = arith.constant 0 : index
    %c0_9 = arith.constant 0 : index
    %6 = vector.load %arg4[%c0_7, %c0_8, %c0_9] : memref<20x1x16xf32, #tpu.memory_space<vmem>>, vector<20x1x16xf32>
    %cst_10 = arith.constant dense<0.000000e+00> : vector<8x16xf32>
    %7 = vector.multi_reduction <add>, %4, %cst_10 [0] : vector<20x8x16xf32> to vector<8x16xf32>
    %8 = vector.shape_cast %7 : vector<8x16xf32> to vector<1x8x16xf32>
    %cst_11 = arith.constant dense<0.000000e+00> : vector<1x8xf32>
    %9 = vector.multi_reduction <add>, %8, %cst_11 [2] : vector<1x8x16xf32> to vector<1x8xf32>
    %10 = vector.shape_cast %9 : vector<1x8xf32> to vector<1x8x1xf32>
    %cst_12 = arith.constant 3.200000e+02 : f32
    %11 = vector.broadcast %cst_12 : f32 to vector<1x8x1xf32>
    %12 = arith.divf %10, %11 : vector<1x8x1xf32>
    %13 = vector.broadcast %12 : vector<1x8x1xf32> to vector<20x8x16xf32>
    %14 = arith.subf %4, %13 : vector<20x8x16xf32>
    %15 = arith.mulf %14, %14 : vector<20x8x16xf32>
    %cst_13 = arith.constant dense<0.000000e+00> : vector<8x16xf32>
    %16 = vector.multi_reduction <add>, %15, %cst_13 [0] : vector<20x8x16xf32> to vector<8x16xf32>
    %17 = vector.shape_cast %16 : vector<8x16xf32> to vector<1x8x16xf32>
    %cst_14 = arith.constant dense<0.000000e+00> : vector<1x8xf32>
    %18 = vector.multi_reduction <add>, %17, %cst_14 [2] : vector<1x8x16xf32> to vector<1x8xf32>
    %19 = vector.shape_cast %18 : vector<1x8xf32> to vector<1x8x1xf32>
    %cst_15 = arith.constant 3.200000e+02 : f32
    %20 = vector.broadcast %cst_15 : f32 to vector<1x8x1xf32>
    %21 = arith.divf %19, %20 : vector<1x8x1xf32>
    %cst_16 = arith.constant 9.99999974E-6 : f32
    %22 = vector.broadcast %cst_16 : f32 to vector<1x8x1xf32>
    %23 = arith.addf %21, %22 : vector<1x8x1xf32>
    %24 = math.rsqrt %23 : vector<1x8x1xf32>
    %25 = vector.broadcast %24 : vector<1x8x1xf32> to vector<20x8x16xf32>
    %26 = arith.mulf %14, %25 : vector<20x8x16xf32>
    %27 = vector.broadcast %5 : vector<20x1x16xf32> to vector<20x8x16xf32>
    %28 = arith.mulf %26, %27 : vector<20x8x16xf32>
    %29 = vector.broadcast %6 : vector<20x1x16xf32> to vector<20x8x16xf32>
    %30 = arith.addf %28, %29 : vector<20x8x16xf32>
    %cst_17 = arith.constant 0.000000e+00 : f32
    %31 = vector.broadcast %cst_17 : f32 to vector<20x8x16xf32>
    %32 = arith.maximumf %30, %31 : vector<20x8x16xf32>
    %33 = vector.shape_cast %32 : vector<20x8x16xf32> to vector<160x16xf32>
    %c0_18 = arith.constant 0 : index
    %c0_19 = arith.constant 0 : index
    %34 = vector.load %arg5[%c0_18, %c0_19] : memref<16x16xf32, #tpu.memory_space<vmem>>, vector<16x16xf32>
    %cst_20 = arith.constant dense<0.000000e+00> : vector<160x16xf32>
    %35 = tpu.matmul %33, %34, %cst_20 {dimension_numbers = #tpu.dot_dimension_numbers<[1], [0], [0], [1], [0, 0, 1, 1], [], []>} : vector<160x16xf32>, vector<16x16xf32>, vector<160x16xf32> -> vector<160x16xf32>
    %36 = vector.shape_cast %35 : vector<160x16xf32> to vector<20x8x16xf32>
    %c0_21 = arith.constant 0 : index
    %c0_22 = arith.constant 0 : index
    %c0_23 = arith.constant 0 : index
    %37 = vector.load %arg6[%c0_21, %c0_22, %c0_23] : memref<20x1x16xf32, #tpu.memory_space<vmem>>, vector<20x1x16xf32>
    %c0_24 = arith.constant 0 : index
    %c0_25 = arith.constant 0 : index
    %c0_26 = arith.constant 0 : index
    %38 = vector.load %arg7[%c0_24, %c0_25, %c0_26] : memref<20x1x16xf32, #tpu.memory_space<vmem>>, vector<20x1x16xf32>
    %cst_27 = arith.constant dense<0.000000e+00> : vector<8x16xf32>
    %39 = vector.multi_reduction <add>, %36, %cst_27 [0] : vector<20x8x16xf32> to vector<8x16xf32>
    %40 = vector.shape_cast %39 : vector<8x16xf32> to vector<1x8x16xf32>
    %cst_28 = arith.constant dense<0.000000e+00> : vector<1x8xf32>
    %41 = vector.multi_reduction <add>, %40, %cst_28 [2] : vector<1x8x16xf32> to vector<1x8xf32>
    %42 = vector.shape_cast %41 : vector<1x8xf32> to vector<1x8x1xf32>
    %cst_29 = arith.constant 3.200000e+02 : f32
    %43 = vector.broadcast %cst_29 : f32 to vector<1x8x1xf32>
    %44 = arith.divf %42, %43 : vector<1x8x1xf32>
    %45 = vector.broadcast %44 : vector<1x8x1xf32> to vector<20x8x16xf32>
    %46 = arith.subf %36, %45 : vector<20x8x16xf32>
    %47 = arith.mulf %46, %46 : vector<20x8x16xf32>
    %cst_30 = arith.constant dense<0.000000e+00> : vector<8x16xf32>
    %48 = vector.multi_reduction <add>, %47, %cst_30 [0] : vector<20x8x16xf32> to vector<8x16xf32>
    %49 = vector.shape_cast %48 : vector<8x16xf32> to vector<1x8x16xf32>
    %cst_31 = arith.constant dense<0.000000e+00> : vector<1x8xf32>
    %50 = vector.multi_reduction <add>, %49, %cst_31 [2] : vector<1x8x16xf32> to vector<1x8xf32>
    %51 = vector.shape_cast %50 : vector<1x8xf32> to vector<1x8x1xf32>
    %cst_32 = arith.constant 3.200000e+02 : f32
    %52 = vector.broadcast %cst_32 : f32 to vector<1x8x1xf32>
    %53 = arith.divf %51, %52 : vector<1x8x1xf32>
    %cst_33 = arith.constant 9.99999974E-6 : f32
    %54 = vector.broadcast %cst_33 : f32 to vector<1x8x1xf32>
    %55 = arith.addf %53, %54 : vector<1x8x1xf32>
    %56 = math.rsqrt %55 : vector<1x8x1xf32>
    %57 = vector.broadcast %56 : vector<1x8x1xf32> to vector<20x8x16xf32>
    %58 = arith.mulf %46, %57 : vector<20x8x16xf32>
    %59 = vector.broadcast %37 : vector<20x1x16xf32> to vector<20x8x16xf32>
    %60 = arith.mulf %58, %59 : vector<20x8x16xf32>
    %61 = vector.broadcast %38 : vector<20x1x16xf32> to vector<20x8x16xf32>
    %62 = arith.addf %60, %61 : vector<20x8x16xf32>
    %c0_34 = arith.constant 0 : index
    %c0_35 = arith.constant 0 : index
    %63 = vector.load %arg8[%c0_34, %c0_35] : memref<5x16xf32, #tpu.memory_space<vmem>>, vector<5x16xf32>
    %cst_36 = arith.constant dense<0.000000e+00> : vector<160x16xf32>
    %64 = tpu.matmul %1, %63, %cst_36 {dimension_numbers = #tpu.dot_dimension_numbers<[1], [0], [0], [1], [0, 0, 1, 1], [], []>} : vector<160x5xf32>, vector<5x16xf32>, vector<160x16xf32> -> vector<160x16xf32>
    %65 = vector.shape_cast %64 : vector<160x16xf32> to vector<20x8x16xf32>
    %c0_37 = arith.constant 0 : index
    %c0_38 = arith.constant 0 : index
    %c0_39 = arith.constant 0 : index
    %66 = vector.load %arg9[%c0_37, %c0_38, %c0_39] : memref<20x1x16xf32, #tpu.memory_space<vmem>>, vector<20x1x16xf32>
    %c0_40 = arith.constant 0 : index
    %c0_41 = arith.constant 0 : index
    %c0_42 = arith.constant 0 : index
    %67 = vector.load %arg10[%c0_40, %c0_41, %c0_42] : memref<20x1x16xf32, #tpu.memory_space<vmem>>, vector<20x1x16xf32>
    %cst_43 = arith.constant dense<0.000000e+00> : vector<8x16xf32>
    %68 = vector.multi_reduction <add>, %65, %cst_43 [0] : vector<20x8x16xf32> to vector<8x16xf32>
    %69 = vector.shape_cast %68 : vector<8x16xf32> to vector<1x8x16xf32>
    %cst_44 = arith.constant dense<0.000000e+00> : vector<1x8xf32>
    %70 = vector.multi_reduction <add>, %69, %cst_44 [2] : vector<1x8x16xf32> to vector<1x8xf32>
    %71 = vector.shape_cast %70 : vector<1x8xf32> to vector<1x8x1xf32>
    %cst_45 = arith.constant 3.200000e+02 : f32
    %72 = vector.broadcast %cst_45 : f32 to vector<1x8x1xf32>
    %73 = arith.divf %71, %72 : vector<1x8x1xf32>
    %74 = vector.broadcast %73 : vector<1x8x1xf32> to vector<20x8x16xf32>
    %75 = arith.subf %65, %74 : vector<20x8x16xf32>
    %76 = arith.mulf %75, %75 : vector<20x8x16xf32>
    %cst_46 = arith.constant dense<0.000000e+00> : vector<8x16xf32>
    %77 = vector.multi_reduction <add>, %76, %cst_46 [0] : vector<20x8x16xf32> to vector<8x16xf32>
    %78 = vector.shape_cast %77 : vector<8x16xf32> to vector<1x8x16xf32>
    %cst_47 = arith.constant dense<0.000000e+00> : vector<1x8xf32>
    %79 = vector.multi_reduction <add>, %78, %cst_47 [2] : vector<1x8x16xf32> to vector<1x8xf32>
    %80 = vector.shape_cast %79 : vector<1x8xf32> to vector<1x8x1xf32>
    %cst_48 = arith.constant 3.200000e+02 : f32
    %81 = vector.broadcast %cst_48 : f32 to vector<1x8x1xf32>
    %82 = arith.divf %80, %81 : vector<1x8x1xf32>
    %cst_49 = arith.constant 9.99999974E-6 : f32
    %83 = vector.broadcast %cst_49 : f32 to vector<1x8x1xf32>
    %84 = arith.addf %82, %83 : vector<1x8x1xf32>
    %85 = math.rsqrt %84 : vector<1x8x1xf32>
    %86 = vector.broadcast %85 : vector<1x8x1xf32> to vector<20x8x16xf32>
    %87 = arith.mulf %75, %86 : vector<20x8x16xf32>
    %88 = vector.broadcast %66 : vector<20x1x16xf32> to vector<20x8x16xf32>
    %89 = arith.mulf %87, %88 : vector<20x8x16xf32>
    %90 = vector.broadcast %67 : vector<20x1x16xf32> to vector<20x8x16xf32>
    %91 = arith.addf %89, %90 : vector<20x8x16xf32>
    %92 = arith.addf %62, %91 : vector<20x8x16xf32>
    %cst_50 = arith.constant 0.000000e+00 : f32
    %93 = vector.broadcast %cst_50 : f32 to vector<20x8x16xf32>
    %94 = arith.maximumf %92, %93 : vector<20x8x16xf32>
    %c0_51 = arith.constant 0 : index
    %c0_52 = arith.constant 0 : index
    %c0_53 = arith.constant 0 : index
    %95 = vector.load %arg11[%c0_51, %c0_52, %c0_53] : memref<20x8x16xf32, #tpu.memory_space<vmem>>, vector<20x8x16xf32>
    tpu.vector_store %arg11[%c0_51, %c0_52, %c0_53], %94 {strides = array<i32>} : memref<20x8x16xf32, #tpu.memory_space<vmem>>, vector<20x8x16xf32>,
    return
  }
  func.func @transform_0(%arg0: i32) -> (i32, i32, i32) {
    %c0_i32 = arith.constant 0 : i32
    %c0_i32_0 = arith.constant 0 : i32
    %c0_i32_1 = arith.constant 0 : i32
    return %c0_i32, %arg0, %c0_i32_0 : i32, i32, i32
  }
  func.func @transform_1(%arg0: i32) -> (i32, i32) {
    %c0_i32 = arith.constant 0 : i32
    %c0_i32_0 = arith.constant 0 : i32
    %c0_i32_1 = arith.constant 0 : i32
    return %c0_i32, %c0_i32_0 : i32, i32
  }
  func.func @transform_2(%arg0: i32) -> (i32, i32, i32) {
    %c0_i32 = arith.constant 0 : i32
    %c0_i32_0 = arith.constant 0 : i32
    %c0_i32_1 = arith.constant 0 : i32
    %c0_i32_2 = arith.constant 0 : i32
    return %c0_i32, %c0_i32_0, %c0_i32_1 : i32, i32, i32
  }
  func.func @transform_3(%arg0: i32) -> (i32, i32, i32) {
    %c0_i32 = arith.constant 0 : i32
    %c0_i32_0 = arith.constant 0 : i32
    %c0_i32_1 = arith.constant 0 : i32
    %c0_i32_2 = arith.constant 0 : i32
    return %c0_i32, %c0_i32_0, %c0_i32_1 : i32, i32, i32
  }
  func.func @transform_4(%arg0: i32) -> (i32, i32) {
    %c0_i32 = arith.constant 0 : i32
    %c0_i32_0 = arith.constant 0 : i32
    %c0_i32_1 = arith.constant 0 : i32
    return %c0_i32, %c0_i32_0 : i32, i32
  }
  func.func @transform_5(%arg0: i32) -> (i32, i32, i32) {
    %c0_i32 = arith.constant 0 : i32
    %c0_i32_0 = arith.constant 0 : i32
    %c0_i32_1 = arith.constant 0 : i32
    %c0_i32_2 = arith.constant 0 : i32
    return %c0_i32, %c0_i32_0, %c0_i32_1 : i32, i32, i32
  }
  func.func @transform_6(%arg0: i32) -> (i32, i32, i32) {
    %c0_i32 = arith.constant 0 : i32
    %c0_i32_0 = arith.constant 0 : i32
    %c0_i32_1 = arith.constant 0 : i32
    %c0_i32_2 = arith.constant 0 : i32
    return %c0_i32, %c0_i32_0, %c0_i32_1 : i32, i32, i32
  }
  func.func @transform_7(%arg0: i32) -> (i32, i32) {
    %c0_i32 = arith.constant 0 : i32
    %c0_i32_0 = arith.constant 0 : i32
    %c0_i32_1 = arith.constant 0 : i32
    return %c0_i32, %c0_i32_0 : i32, i32
  }
  func.func @transform_8(%arg0: i32) -> (i32, i32, i32) {
    %c0_i32 = arith.constant 0 : i32
    %c0_i32_0 = arith.constant 0 : i32
    %c0_i32_1 = arith.constant 0 : i32
    %c0_i32_2 = arith.constant 0 : i32
    return %c0_i32, %c0_i32_0, %c0_i32_1 : i32, i32, i32
  }
  func.func @transform_9(%arg0: i32) -> (i32, i32, i32) {
    %c0_i32 = arith.constant 0 : i32
    %c0_i32_0 = arith.constant 0 : i32
    %c0_i32_1 = arith.constant 0 : i32
    %c0_i32_2 = arith.constant 0 : i32
    return %c0_i32, %c0_i32_0, %c0_i32_1 : i32, i32, i32
  }
  func.func @transform_10(%arg0: i32) -> (i32, i32, i32) {
    %c0_i32 = arith.constant 0 : i32
    %c0_i32_0 = arith.constant 0 : i32
    %c0_i32_1 = arith.constant 0 : i32
    return %c0_i32, %arg0, %c0_i32_0 : i32, i32, i32
  }
}

</mosaic_0001>

<bundles_post_ra>
// kernel: tpu_custom_call.1
= control target key start
LH: loop header
LB: loop body
LE: loop exit
PB: predicated region body
PF: predicated region fallthrough
CT: control target
= control target key end

     0   :  { %vm117_vm0 = vcmask 1044480   ;;  %vm56_vm1 = vcmask 39936   ;;  %vm326_vm2 = vcmask 130048   ;;  %s4003_s1 = inlined_call_operand.vmem [shape: f32[5,16], index: 1, kind: input, shape index: {}]   ;;  %s4004_s0 = inlined_call_operand.vmem [shape: f32[20,5,5], index: 0, kind: input, shape index: {}]   ;;  %s4005_s4 = inlined_call_operand.vmem [shape: f32[16,16], index: 4, kind: input, shape index: {}]   ;;  %s4006_s7 = inlined_call_operand.vmem [shape: f32[5,16], index: 7, kind: input, shape index: {}]   ;;  %s4007_s2 = inlined_call_operand.vmem [shape: f32[20,1,16], index: 2, kind: input, shape index: {}]   ;;  %s4008_s3 = inlined_call_operand.vmem [shape: f32[20,1,16], index: 3, kind: input, shape index: {}]   ;;  %s4009_s5 = inlined_call_operand.vmem [shape: f32[20,1,16], index: 5, kind: input, shape index: {}]   ;;  %s4010_s6 = inlined_call_operand.vmem [shape: f32[20,1,16], index: 6, kind: input, shape index: {}]   ;;  %s4011_s8 = inlined_call_operand.vmem [shape: f32[20,1,16], index: 8, kind: input, shape index: {}]   ;;  %s4012_s9 = inlined_call_operand.vmem [shape: f32[20,1,16], index: 9, kind: input, shape index: {}]   ;;  %s4013_s10 = inlined_call_operand.vmem [shape: f32[20,5,16], index: 10, kind: output, shape index: {}]  }
   0x1   :  { %v55_v0 = vld [vmem:[%s4003_s1] sm:$0x1f]  ;;  %v2592_v2 = vld [vmem:[%s4004_s0 + $0x8] sm:$0xff]  ;;  %v2599_v3 = vld [vmem:[%s4004_s0 + $0x10] sm:$0xff] }
   0x2   :  { %v35_v1 = vld [vmem:[%s4004_s0] sm:$0xff]  ;;  %2418 = vmatprep.subr.msk.mxu0 %vm117_vm0, %v55_v0  ;;  %2520 = vmatprep.subr.msk.mxu1 %vm117_vm0, %v55_v0  ;;  %v2609_v4 = vld [vmem:[%s4004_s0 + $0x50] sm:$0xff]  ;;  %v2616_v5 = vld [vmem:[%s4004_s0 + $0x18] sm:$0xff] }
   0x3   :  { %2420 = vmatprep.mubr.msk.f32.mxu0 %vm56_vm1, %v35_v1  ;;  %2419 = vmatpush3.msk.msra.mxu0 %vm117_vm0, %v55_v0  ;;  %v2623_v6 = vld [vmem:[%s4004_s0 + $0x58] sm:$0xff]  ;;  %v2628_v7 = vld [vmem:[%s4004_s0 + $0x60] sm:$0xff]  ;;  %v2642_v9 = vld [vmem:[%s4004_s0 + $0x68] sm:$0xff] }
   0x4   :  { %2421 = vmatmul.mubr.msk.f32.vlgmr.msra.gmra.mrb[0].mxu0 %vm56_vm1, %v2592_v2  ;;  %2521 = vmatpush3.msk.msra.mxu1 %vm117_vm0, %v55_v0  ;;  %v2633_v8 = vld [vmem:[%s4004_s0 + $0x20] sm:$0xff]  ;;  %v2649_v10 = vld [vmem:[%s4004_s0 + $0x70] sm:$0xff]  ;;  %v2656_v11 = vld [vmem:[%s4004_s0 + $0x28] sm:$0xff] }
   0x5   :  { %2423 = vmatprep.mubr.msk.f32.mxu0 %vm56_vm1, %v2599_v3  ;;  %2435 = vmatprep.mubr.msk.f32.mxu1 %vm56_vm1, %v2609_v4  ;;  %v2661_v12 = vld [vmem:[%s4004_s0 + $0x30] sm:$0xff]  ;;  %v2670_v13 = vld [vmem:[%s4004_s0 + $0x78] sm:$0xff]  ;;  %v2677_v14 = vld [vmem:[%s4004_s0 + $0x80] sm:$0xff] }
   0x6   :  { %2436 = vmatmul.mubr.msk.f32.vlgmr.msra.gmra.mrb[0].mxu1 %vm56_vm1, %v2623_v6  ;;  %v2684_v15 = vld [vmem:[%s4004_s0 + $0x38] sm:$0xff]  ;;  %v2689_v16 = vld [vmem:[%s4004_s0 + $0x40] sm:$0xff]  ;;  %v2698_v17 = vld [vmem:[%s4004_s0 + $0x88] sm:$0xff] }
   0x7   :  { %2438 = vmatprep.mubr.msk.f32.mxu1 %vm56_vm1, %v2628_v7  ;;  %v2705_v18 = vld [vmem:[%s4004_s0 + $0x90] sm:$0xff]  ;;  %v2712_v19 = vld [vmem:[%s4004_s0 + $0x48] sm:$0xff]  ;;  %v2721_v20 = vld [vmem:[%s4004_s0 + $0x98] sm:$0xff] }
   0x8   :  { %2424 = vmatmul.mubr.msk.f32.gmra.mrb[2].mxu0 %vm56_vm1, %v2616_v5 }
   0x9   :  { %2426 = vmatprep.mubr.msk.f32.mxu0 %vm56_vm1, %v2633_v8 }
   0xa   :  { %2439 = vmatmul.mubr.msk.f32.gmra.mrb[2].mxu1 %vm56_vm1, %v2642_v9 }
   0xb   :  { %2441 = vmatprep.mubr.msk.f32.mxu1 %vm56_vm1, %v2649_v10 }
   0xc   :  { %2427 = vmatmul.mubr.msk.f32.gmra.mrb[4].mxu0 %vm56_vm1, %v2656_v11 }
   0xd   :  { %2429 = vmatprep.mubr.msk.f32.mxu0 %vm56_vm1, %v2661_v12 }
   0xe   :  { %2442 = vmatmul.mubr.msk.f32.gmra.mrb[4].mxu1 %vm56_vm1, %v2670_v13 }
   0xf   :  { %2444 = vmatprep.mubr.msk.f32.mxu1 %vm56_vm1, %v2677_v14 }
  0x10   :  { %2430 = vmatmul.mubr.msk.f32.gmra.mrb[6].mxu0 %vm56_vm1, %v2684_v15 }
  0x11   :  { %2432 = vmatprep.mubr.msk.f32.mxu0 %vm56_vm1, %v2689_v16 }
  0x12   :  { %2445 = vmatmul.mubr.msk.f32.gmra.mrb[6].mxu1 %vm56_vm1, %v2698_v17 }
  0x13   :  { %2447 = vmatprep.mubr.msk.f32.mxu1 %vm56_vm1, %v2705_v18 }
  0x14   :  { %2433 = vmatmul.mubr.msk.f32.gmra.mrb[8].mxu0 %vm56_vm1, %v2712_v19 }
  0x15   :  { %2486 = vmatprep.mubr.msk.f32.mxu0 %vm56_vm1, %v35_v1 }
  0x16   :  { %2448 = vmatmul.mubr.msk.f32.gmra.mrb[8].mxu1 %vm56_vm1, %v2721_v20 }
  0xd7   :  { %v2728_v21 = vpop.f32.mrb[0].mxu0 }
  0xd8   :  { %v328_v22 = vsel %vm326_vm2, %v2728_v21, 0.0  ;;  %v187_v23 = vpop.f32.mrb[1].mxu0 }
  0xd9   :  { %v327_v24 = vsel %vm326_vm2, %v187_v23, 0.0  ;;  %v2733_v25 = vpop.f32.mrb[0].mxu1 }
  0xda   :  { %v329_v26 = vadd.f32 %v328_v22, %v327_v24  ;;  %v2735_v27 = vpop.f32.mrb[1].mxu1  ;;  %v348_v62 = vsel %vm326_vm2, %v2733_v25, 0.0 }
  0xdb   :  { %v2425_v28 = vpop.f32.mrb[2].mxu0  ;;  %v346_v59 = vsel %vm326_vm2, %v2735_v27, 0.0 }
  0xdc   :  { %v197_v29 = vpop.f32.mrb[3].mxu0  ;;  %v332_v34 = vsel %vm326_vm2, %v2425_v28, 0.0 }
  0xdd   :  { %v330_v30 = vsel %vm326_vm2, %v197_v29, 0.0  ;;  %v2738_v31 = vpop.f32.mrb[2].mxu1 }
  0xde   :  { %v331_v32 = vadd.f32 %v330_v30, %v329_v26  ;;  %v2740_v33 = vpop.f32.mrb[3].mxu1  ;;  %v352_v22 = vsel %vm326_vm2, %v2738_v31, 0.0 }
  0xdf   :  { %v2428_v35 = vpop.f32.mrb[4].mxu0  ;;  %v350_v63 = vsel %vm326_vm2, %v2740_v33, 0.0 }
  0xe0   :  { %v207_v36 = vpop.f32.mrb[5].mxu0  ;;  %v333_v37 = vadd.f32 %v332_v34, %v331_v32  ;;  %v336_v42 = vsel %vm326_vm2, %v2428_v35, 0.0 }
  0xe1   :  { %v334_v38 = vsel %vm326_vm2, %v207_v36, 0.0  ;;  %v2744_v39 = vpop.f32.mrb[4].mxu1 }
  0xe2   :  { %v335_v40 = vadd.f32 %v334_v38, %v333_v37  ;;  %v2746_v41 = vpop.f32.mrb[5].mxu1  ;;  %v356_v32 = vsel %vm326_vm2, %v2744_v39, 0.0 }
  0xe3   :  { %v2431_v43 = vpop.f32.mrb[6].mxu0  ;;  %v354_v24 = vsel %vm326_vm2, %v2746_v41, 0.0 }
  0xe4   :  { %v217_v44 = vpop.f32.mrb[7].mxu0  ;;  %v337_v45 = vadd.f32 %v336_v42, %v335_v40  ;;  %v340_v50 = vsel %vm326_vm2, %v2431_v43, 0.0 }
  0xe5   :  { %v338_v46 = vsel %vm326_vm2, %v217_v44, 0.0  ;;  %v2750_v47 = vpop.f32.mrb[6].mxu1 }
  0xe6   :  { %v339_v48 = vadd.f32 %v338_v46, %v337_v45  ;;  %v2752_v49 = vpop.f32.mrb[7].mxu1  ;;  %v360_v40 = vsel %vm326_vm2, %v2750_v47, 0.0 }
  0xe7   :  { %v2434_v51 = vpop.f32.mrb[8].mxu0  ;;  %v358_v34 = vsel %vm326_vm2, %v2752_v49, 0.0 }
  0xe8   :  { %v227_v52 = vpop.f32.mrb[9].mxu0  ;;  %v341_v53 = vadd.f32 %v340_v50, %v339_v48  ;;  %v344_v58 = vsel %vm326_vm2, %v2434_v51, 0.0 }
  0xe9   :  { %v342_v54 = vsel %vm326_vm2, %v227_v52, 0.0  ;;  %v2756_v55 = vpop.f32.mrb[8].mxu1 }
  0xea   :  { %v343_v56 = vadd.f32 %v342_v54, %v341_v53  ;;  %v2758_v57 = vpop.f32.mrb[9].mxu1  ;;  %v364_v48 = vsel %vm326_vm2, %v2756_v55, 0.0 }
  0xeb   :  { %v362_v42 = vsel %vm326_vm2, %v2758_v57, 0.0 }
  0xec   :  { %v345_v60 = vadd.f32 %v344_v58, %v343_v56 }
  0xee   :  { %v347_v61 = vadd.f32 %v346_v59, %v345_v60 }
  0xf0   :  { %v349_v0 = vadd.f32 %v348_v62, %v347_v61 }
  0xf2   :  { %v351_v1 = vadd.f32 %v350_v63, %v349_v0 }
  0xf4   :  { %v353_v26 = vadd.f32 %v352_v22, %v351_v1 }
  0xf6   :  { %v355_v30 = vadd.f32 %v354_v24, %v353_v26 }
  0xf8   :  { %v357_v37 = vadd.f32 %v356_v32, %v355_v30 }
  0xfa   :  { %v359_v38 = vadd.f32 %v358_v34, %v357_v37 }
  0xfc   :  { %v361_v45 = vadd.f32 %v360_v40, %v359_v38 }
  0xfe   :  { %v363_v46 = vadd.f32 %v362_v42, %v361_v45 }
 0x100   :  { %v365_v50 = vadd.f32 %v364_v48, %v363_v46 }
 0x102   :  { %v366_v53 = vsel %vm326_vm2, %v365_v50, 0.0 }
 0x103   :  { %367 = vadd.xlane.f32.xlu0 %v366_v53 }
 0x190   :  { %v368_v54 = vpop.xlane.xlu0 %367 }
 0x191   :  { %v2782_v56 = vmul.f32 0.003125, %v368_v54 }
 0x193   :  { %v2785_v58 = vsub.f32 %v187_v23, %v2782_v56  ;;  %v2789_v59 = vsub.f32 %v2728_v21, %v2782_v56  ;;  %v2792_v60 = vsub.f32 %v197_v29, %v2782_v56  ;;  %v2795_v61 = vsub.f32 %v2425_v28, %v2782_v56 }
 0x194   :  { %v2802_v0 = vsub.f32 %v207_v36, %v2782_v56  ;;  %v2807_v21 = vsub.f32 %v2428_v35, %v2782_v56  ;;  %v2814_v24 = vsub.f32 %v217_v44, %v2782_v56  ;;  %v2820_v35 = vsub.f32 %v2431_v43, %v2782_v56 }
 0x195   :  { %v391_v62 = vmul.f32 %v2785_v58, %v2785_v58  ;;  %v392_v63 = vmul.f32 %v2789_v59, %v2789_v59  ;;  %v393_v23 = vmul.f32 %v2792_v60, %v2792_v60  ;;  %v394_v29 = vmul.f32 %v2795_v61, %v2795_v61 }
 0x196   :  { %v395_v36 = vmul.f32 %v2802_v0, %v2802_v0  ;;  %v396_v32 = vmul.f32 %v2807_v21, %v2807_v21  ;;  %v2826_v38 = vsub.f32 %v227_v52, %v2782_v56  ;;  %v397_v44 = vmul.f32 %v2814_v24, %v2814_v24 }
 0x197   :  { %v411_v28 = vsel %vm326_vm2, %v391_v62, 0.0  ;;  %v412_v1 = vsel %vm326_vm2, %v392_v63, 0.0  ;;  %v414_v26 = vsel %vm326_vm2, %v393_v23, 0.0  ;;  %v416_v34 = vsel %vm326_vm2, %v394_v29, 0.0 }
 0x198   :  { %v413_v22 = vadd.f32 %v412_v1, %v411_v28  ;;  %v418_v40 = vsel %vm326_vm2, %v395_v36, 0.0  ;;  %v2832_v45 = vsub.f32 %v2434_v51, %v2782_v56  ;;  %v398_v43 = vmul.f32 %v2820_v35, %v2820_v35 }
 0x199   :  { %v420_v46 = vsel %vm326_vm2, %v396_v32, 0.0  ;;  %v2839_v50 = vsub.f32 %v2735_v27, %v2782_v56  ;;  %v399_v52 = vmul.f32 %v2826_v38, %v2826_v38  ;;  %v422_v53 = vsel %vm326_vm2, %v397_v44, 0.0 }
 0x19a   :  { %v415_v30 = vadd.f32 %v414_v26, %v413_v22  ;;  %v2846_v51 = vsub.f32 %v2733_v25, %v2782_v56  ;;  %v400_v62 = vmul.f32 %v2832_v45, %v2832_v45  ;;  %v424_v63 = vsel %vm326_vm2, %v398_v43, 0.0 }
 0x19b   :  { %v2853_v27 = vsub.f32 %v2740_v33, %v2782_v56  ;;  %v401_v29 = vmul.f32 %v2839_v50, %v2839_v50  ;;  %v426_v28 = vsel %vm326_vm2, %v399_v52, 0.0  ;;  %v2860_v25 = vsub.f32 %v2738_v31, %v2782_v56 }
 0x19c   :  { %v417_v37 = vadd.f32 %v416_v34, %v415_v30  ;;  %v402_v22 = vmul.f32 %v2846_v51, %v2846_v51  ;;  %v428_v36 = vsel %vm326_vm2, %v400_v62, 0.0  ;;  %v2867_v33 = vsub.f32 %v2746_v41, %v2782_v56 }
 0x19d   :  { %v403_v30 = vmul.f32 %v2853_v27, %v2853_v27  ;;  %v430_v32 = vsel %vm326_vm2, %v401_v29, 0.0  ;;  %v2874_v31 = vsub.f32 %v2744_v39, %v2782_v56  ;;  %v2881_v41 = vsub.f32 %v2752_v49, %v2782_v56 }
 0x19e   :  { %v419_v42 = vadd.f32 %v418_v40, %v417_v37  ;;  %v404_v37 = vmul.f32 %v2860_v25, %v2860_v25  ;;  %v432_v44 = vsel %vm326_vm2, %v402_v22, 0.0  ;;  %v2888_v39 = vsub.f32 %v2750_v47, %v2782_v56 }
 0x19f   :  { %v434_v43 = vsel %vm326_vm2, %v403_v30, 0.0  ;;  %v2895_v49 = vsub.f32 %v2758_v57, %v2782_v56  ;;  %v2902_v47 = vsub.f32 %v2756_v55, %v2782_v56 }
 0x1a0   :  { %v421_v48 = vadd.f32 %v420_v46, %v419_v42  ;;  %v405_v42 = vmul.f32 %v2867_v33, %v2867_v33  ;;  %v436_v52 = vsel %vm326_vm2, %v404_v37, 0.0 }
 0x1a1   :  { %v409_v57 = vmul.f32 %v2895_v49, %v2895_v49 }
 0x1a2   :  { %v423_v54 = vadd.f32 %v422_v53, %v421_v48  ;;  %v406_v48 = vmul.f32 %v2874_v31, %v2874_v31  ;;  %v438_v62 = vsel %vm326_vm2, %v405_v42, 0.0  ;;  %v1471_v42 = vld [vmem:[%s4006_s7] sm:$0x1f] }
 0x1a3   :  { %v446_v55 = vsel %vm326_vm2, %v409_v57, 0.0  ;;  %2484 = vmatprep.subr.msk.mxu0 %vm117_vm0, %v1471_v42 }
 0x1a4   :  { %v425_v23 = vadd.f32 %v424_v63, %v423_v54  ;;  %v407_v54 = vmul.f32 %v2881_v41, %v2881_v41  ;;  %v440_v29 = vsel %vm326_vm2, %v406_v48, 0.0  ;;  %2485 = vmatpush3.msk.msra.mxu0 %vm117_vm0, %v1471_v42 }
 0x1a5   :  { %2487 = vmatmul.mubr.msk.f32.vlgmr.msra.gmra.mrb[10].mxu0 %vm56_vm1, %v2592_v2 }
 0x1a6   :  { %v427_v1 = vadd.f32 %v426_v28, %v425_v23  ;;  %v408_v23 = vmul.f32 %v2888_v39, %v2888_v39  ;;  %2489 = vmatprep.mubr.msk.f32.mxu0 %vm56_vm1, %v2599_v3 }
 0x1a8   :  { %v429_v26 = vadd.f32 %v428_v36, %v427_v1  ;;  %v442_v1 = vsel %vm326_vm2, %v407_v54, 0.0  ;;  %v410_v36 = vmul.f32 %v2902_v47, %v2902_v47 }
 0x1a9   :  { %2490 = vmatmul.mubr.msk.f32.gmra.mrb[12].mxu0 %vm56_vm1, %v2616_v5 }
 0x1aa   :  { %v431_v34 = vadd.f32 %v430_v32, %v429_v26  ;;  %v444_v26 = vsel %vm326_vm2, %v408_v23, 0.0  ;;  %v448_v32 = vsel %vm326_vm2, %v410_v36, 0.0  ;;  %2492 = vmatprep.mubr.msk.f32.mxu0 %vm56_vm1, %v2633_v8  ;;  %v2195_v8 = vld [vmem:[%s4007_s2 + $0x2] ss:$0 sm:$0xff] }
 0x1ac   :  { %v433_v40 = vadd.f32 %v432_v44, %v431_v34  ;;  %v776_v44 = vld [vmem:[%s4005_s4] sm:$0xff] }
 0x1ad   :  { %2493 = vmatmul.mubr.msk.f32.gmra.mrb[14].mxu0 %vm56_vm1, %v2656_v11 }
 0x1ae   :  { %v435_v46 = vadd.f32 %v434_v43, %v433_v40  ;;  %v777_v40 = vld [vmem:[%s4005_s4 + $0x8] sm:$0xff]  ;;  %2495 = vmatprep.mubr.msk.f32.mxu0 %vm56_vm1, %v2661_v12 }
 0x1af   :  { %v2516_v43 = vpack.c.bf16 %v777_v40, %v776_v44  ;;  %v2220_v40 = vld [vmem:[%s4008_s3 + $0x7] ss:$0 sm:$0xff] }
 0x1b0   :  { %v437_v53 = vadd.f32 %v436_v52, %v435_v46 }
 0x1b1   :  { %2517 = vmatprep.subr.bf16.mxu1 %v2516_v43  ;;  %2496 = vmatmul.mubr.msk.f32.gmra.mrb[16].mxu0 %vm56_vm1, %v2684_v15  ;;  %v2214_v15 = vld [vmem:[%s4008_s3 + $0x1] ss:$0 sm:$0xff] }
 0x1b2   :  { %v439_v63 = vadd.f32 %v438_v62, %v437_v53  ;;  %2519 = vmatpush3.bf16.msra.mxu1 %v2516_v43  ;;  %2498 = vmatprep.mubr.msk.f32.mxu0 %vm56_vm1, %v2689_v16  ;;  %v2215_v16 = vld [vmem:[%s4008_s3 + $0x2] ss:$0 sm:$0xff]  ;;  %v2216_v53 = vld [vmem:[%s4008_s3 + $0x3] ss:$0 sm:$0xff]  ;;  %v2217_v62 = vld [vmem:[%s4008_s3 + $0x4] ss:$0 sm:$0xff] }
 0x1b3   :  { %v2202_v43 = vld [vmem:[%s4007_s2 + $0x9] ss:$0 sm:$0xff] }
 0x1b4   :  { %v441_v28 = vadd.f32 %v440_v29, %v439_v63 }
 0x1b5   :  { %2499 = vmatmul.mubr.msk.f32.gmra.mrb[18].mxu0 %vm56_vm1, %v2712_v19 }
 0x1b6   :  { %v443_v22 = vadd.f32 %v442_v1, %v441_v28  ;;  %2501 = vmatprep.mubr.msk.f32.mxu0 %vm56_vm1, %v2609_v4 }
 0x1b8   :  { %v445_v30 = vadd.f32 %v444_v26, %v443_v22  ;;  %v2218_v22 = vld [vmem:[%s4008_s3 + $0x5] ss:$0 sm:$0xff]  ;;  %v2200_v26 = vld [vmem:[%s4007_s2 + $0x7] ss:$0 sm:$0xff] }
 0x1b9   :  { %2502 = vmatmul.mubr.msk.f32.gmra.mrb[20].mxu0 %vm56_vm1, %v2623_v6  ;;  %v2193_v6 = vld [vmem:[%s4007_s2] ss:$0 sm:$0xff] }
 0x1ba   :  { %v447_v56 = vadd.f32 %v446_v55, %v445_v30  ;;  %2504 = vmatprep.mubr.msk.f32.mxu0 %vm56_vm1, %v2628_v7  ;;  %v2194_v7 = vld [vmem:[%s4007_s2 + $0x1] ss:$0 sm:$0xff]  ;;  %v2201_v55 = vld [vmem:[%s4007_s2 + $0x8] ss:$0 sm:$0xff] }
 0x1bc   :  { %v449_v34 = vadd.f32 %v448_v32, %v447_v56 }
 0x1bd   :  { %2505 = vmatmul.mubr.msk.f32.gmra.mrb[22].mxu0 %vm56_vm1, %v2642_v9  ;;  %v2213_v9 = vld [vmem:[%s4008_s3] ss:$0 sm:$0xff] }
 0x1be   :  { %v450_v37 = vsel %vm326_vm2, %v449_v34, 0.0  ;;  %2507 = vmatprep.mubr.msk.f32.mxu0 %vm56_vm1, %v2649_v10 }
 0x1bf   :  { %451 = vadd.xlane.f32.xlu0 %v450_v37 }
 0x1c1   :  { %2508 = vmatmul.mubr.msk.f32.gmra.mrb[24].mxu0 %vm56_vm1, %v2670_v13  ;;  %v2196_v13 = vld [vmem:[%s4007_s2 + $0x3] ss:$0 sm:$0xff] }
 0x1c2   :  { %2510 = vmatprep.mubr.msk.f32.mxu0 %vm56_vm1, %v2677_v14 }
 0x1c5   :  { %2511 = vmatmul.mubr.msk.f32.gmra.mrb[26].mxu0 %vm56_vm1, %v2698_v17  ;;  %v2197_v17 = vld [vmem:[%s4007_s2 + $0x4] ss:$0 sm:$0xff] }
 0x1c6   :  { %2513 = vmatprep.mubr.msk.f32.mxu0 %vm56_vm1, %v2705_v18 }
 0x1c9   :  { %2514 = vmatmul.mubr.msk.f32.gmra.mrb[28].mxu0 %vm56_vm1, %v2721_v20 }
 0x24c   :  { %v452_v2 = vpop.xlane.xlu0 %451 }
 0x24d   :  { %v453_v3 = vmul.f32 0.003125, %v452_v2 }
 0x24f   :  { %v454_v4 = vadd.f32 1e-05, %v453_v3  ;;  %v2203_v3 = vld [vmem:[%s4007_s2 + $0xa] ss:$0 sm:$0xff] }
 0x251   :  { %2522 = vrsqrt.f32 %v454_v4 }
 0x25b   :  { %v2965_v5 = vpop.eup %2522 }
 0x25c   :  { %v456_v10 = vmul.f32 %v2965_v5, %v2785_v58  ;;  %v457_v11 = vmul.f32 %v2965_v5, %v2789_v59  ;;  %v458_v12 = vmul.f32 %v2965_v5, %v2792_v60  ;;  %v459_v14 = vmul.f32 %v2965_v5, %v2795_v61 }
 0x25d   :  { %v460_v18 = vmul.f32 %v2965_v5, %v2802_v0  ;;  %v461_v60 = vmul.f32 %v2965_v5, %v2807_v21  ;;  %v462_v61 = vmul.f32 %v2965_v5, %v2814_v24  ;;  %v2198_v0 = vld [vmem:[%s4007_s2 + $0x5] ss:$0 sm:$0xff]  ;;  %v2199_v21 = vld [vmem:[%s4007_s2 + $0x6] ss:$0 sm:$0xff]  ;;  %v463_v28 = vmul.f32 %v2965_v5, %v2820_v35 }
 0x25e   :  { %v596_v19 = vmul.f32 %v2193_v6, %v456_v10  ;;  %v597_v20 = vmul.f32 %v2194_v7, %v457_v11  ;;  %v598_v58 = vmul.f32 %v2195_v8, %v458_v12  ;;  %v599_v59 = vmul.f32 %v2196_v13, %v459_v14  ;;  %v2219_v35 = vld [vmem:[%s4008_s3 + $0x6] ss:$0 sm:$0xff]  ;;  %v2222_v10 = vld [vmem:[%s4008_s3 + $0x9] ss:$0 sm:$0xff]  ;;  %v2204_v12 = vld [vmem:[%s4007_s2 + $0xb] ss:$0 sm:$0xff] }
 0x25f   :  { %v600_v54 = vmul.f32 %v2197_v17, %v460_v18  ;;  %v601_v29 = vmul.f32 %v2198_v0, %v461_v60  ;;  %v602_v36 = vmul.f32 %v2199_v21, %v462_v61  ;;  %v464_v30 = vmul.f32 %v2965_v5, %v2826_v38  ;;  %v2205_v14 = vld [vmem:[%s4007_s2 + $0xc] ss:$0 sm:$0xff]  ;;  %v2207_v61 = vld [vmem:[%s4007_s2 + $0xe] ss:$0 sm:$0xff]  ;;  %v2226_v0 = vld [vmem:[%s4008_s3 + $0xd] ss:$0 sm:$0xff] }
 0x260   :  { %v736_v46 = vadd.f32 %v2213_v9, %v596_v19  ;;  %v737_v48 = vadd.f32 %v2214_v15, %v597_v20  ;;  %v738_v52 = vadd.f32 %v2215_v16, %v598_v58  ;;  %v739_v23 = vadd.f32 %v2216_v53, %v599_v59  ;;  %v2224_v20 = vld [vmem:[%s4008_s3 + $0xb] ss:$0 sm:$0xff]  ;;  %v2206_v59 = vld [vmem:[%s4007_s2 + $0xd] ss:$0 sm:$0xff]  ;;  %v2208_v21 = vld [vmem:[%s4007_s2 + $0xf] ss:$0 sm:$0xff] }
 0x261   :  { %v740_v1 = vadd.f32 %v2217_v62, %v600_v54  ;;  %v741_v32 = vadd.f32 %v2218_v22, %v601_v29  ;;  %v603_v34 = vmul.f32 %v2200_v26, %v463_v28  ;;  %v465_v37 = vmul.f32 %v2965_v5, %v2832_v45  ;;  %v2221_v45 = vld [vmem:[%s4008_s3 + $0x8] ss:$0 sm:$0xff]  ;;  %v2228_v22 = vld [vmem:[%s4008_s3 + $0xf] ss:$0 sm:$0xff]  ;;  %v2210_v26 = vld [vmem:[%s4007_s2 + $0x11] ss:$0 sm:$0xff] }
 0x262   :  { %v756_v24 = vmax.f32 %v736_v46, 0.0  ;;  %v757_v63 = vmax.f32 %v737_v48, 0.0  ;;  %v758_v57 = vmax.f32 %v738_v52, 0.0  ;;  %v759_v56 = vmax.f32 %v739_v23, 0.0 }
 0x263   :  { %v760_v44 = vmax.f32 %v740_v1, 0.0  ;;  %v742_v38 = vadd.f32 %v2219_v35, %v602_v36  ;;  %v604_v42 = vmul.f32 %v2201_v55, %v464_v30  ;;  %v466_v2 = vmul.f32 %v2965_v5, %v2839_v50  ;;  %v2211_v35 = vld [vmem:[%s4007_s2 + $0x12] ss:$0 sm:$0xff] }
 0x264   :  { %2454 = vmatprep.mubr.msk.f32.mxu1 %vm326_vm2, %v756_v24  ;;  %v761_v4 = vmax.f32 %v741_v32, 0.0  ;;  %v743_v6 = vadd.f32 %v2220_v40, %v603_v34  ;;  %v605_v7 = vmul.f32 %v2202_v43, %v465_v37  ;;  %v467_v8 = vmul.f32 %v2965_v5, %v2846_v51  ;;  %v2223_v51 = vld [vmem:[%s4008_s3 + $0xa] ss:$0 sm:$0xff]  ;;  %v2212_v40 = vld [vmem:[%s4007_s2 + $0x13] ss:$0 sm:$0xff] }
 0x265   :  { %2455 = vmatmul.mubr.msk.f32.vlgmr.msra.gmra.mrb[10].mxu1 %vm326_vm2, %v757_v63  ;;  %v762_v9 = vmax.f32 %v742_v38, 0.0  ;;  %v744_v50 = vadd.f32 %v2221_v45, %v604_v42  ;;  %v606_v11 = vmul.f32 %v2203_v3, %v466_v2  ;;  %v468_v13 = vmul.f32 %v2965_v5, %v2853_v27  ;;  %v2209_v63 = vld [vmem:[%s4007_s2 + $0x10] ss:$0 sm:$0xff]  ;;  %v2231_v42 = vld [vmem:[%s4008_s3 + $0x12] ss:$0 sm:$0xff] }
 0x266   :  { %2457 = vmatprep.mubr.msk.f32.mxu1 %vm326_vm2, %v758_v57  ;;  %v763_v15 = vmax.f32 %v743_v6, 0.0  ;;  %v745_v16 = vadd.f32 %v2222_v10, %v605_v7  ;;  %v607_v17 = vmul.f32 %v2204_v12, %v467_v8  ;;  %v469_v18 = vmul.f32 %v2965_v5, %v2860_v25  ;;  %v2225_v25 = vld [vmem:[%s4008_s3 + $0xc] ss:$0 sm:$0xff]  ;;  %v2232_v3 = vld [vmem:[%s4008_s3 + $0x13] ss:$0 sm:$0xff] }
 0x267   :  { %v764_v19 = vmax.f32 %v744_v50, 0.0  ;;  %v746_v27 = vadd.f32 %v2223_v51, %v606_v11  ;;  %v608_v58 = vmul.f32 %v2205_v14, %v468_v13  ;;  %v470_v60 = vmul.f32 %v2965_v5, %v2867_v33 }
 0x268   :  { %v765_v46 = vmax.f32 %v745_v16, 0.0  ;;  %v747_v48 = vadd.f32 %v2224_v20, %v607_v17  ;;  %v609_v52 = vmul.f32 %v2206_v59, %v469_v18  ;;  %v471_v53 = vmul.f32 %v2965_v5, %v2874_v31  ;;  %v2227_v31 = vld [vmem:[%s4008_s3 + $0xe] ss:$0 sm:$0xff] }
 0x269   :  { %2458 = vmatmul.mubr.msk.f32.gmra.mrb[12].mxu1 %vm326_vm2, %v759_v56  ;;  %v766_v54 = vmax.f32 %v746_v27, 0.0  ;;  %v748_v33 = vadd.f32 %v2225_v25, %v608_v58  ;;  %v610_v62 = vmul.f32 %v2207_v61, %v470_v60  ;;  %v472_v24 = vmul.f32 %v2965_v5, %v2881_v41 }
 0x26a   :  { %2460 = vmatprep.mubr.msk.f32.mxu1 %vm326_vm2, %v760_v44  ;;  %v767_v23 = vmax.f32 %v747_v48, 0.0  ;;  %v749_v29 = vadd.f32 %v2226_v0, %v609_v52  ;;  %v611_v28 = vmul.f32 %v2208_v21, %v471_v53  ;;  %v473_v57 = vmul.f32 %v2965_v5, %v2888_v39  ;;  %v2229_v39 = vld [vmem:[%s4008_s3 + $0x10] ss:$0 sm:$0xff]  ;;  %v2230_v44 = vld [vmem:[%s4008_s3 + $0x11] ss:$0 sm:$0xff] }
 0x26b   :  { %v768_v1 = vmax.f32 %v748_v33, 0.0  ;;  %v750_v41 = vadd.f32 %v2227_v31, %v610_v62  ;;  %v612_v36 = vmul.f32 %v2209_v63, %v472_v24  ;;  %v474_v30 = vmul.f32 %v2965_v5, %v2895_v49 }
 0x26c   :  { %v769_v55 = vmax.f32 %v749_v29, 0.0  ;;  %v751_v56 = vadd.f32 %v2228_v22, %v611_v28  ;;  %v613_v32 = vmul.f32 %v2210_v26, %v473_v57  ;;  %v475_v34 = vmul.f32 %v2965_v5, %v2902_v47 }
 0x26d   :  { %2461 = vmatmul.mubr.msk.f32.gmra.mrb[14].mxu1 %vm326_vm2, %v761_v4  ;;  %v770_v37 = vmax.f32 %v750_v41, 0.0  ;;  %v752_v49 = vadd.f32 %v2229_v39, %v612_v36  ;;  %v614_v38 = vmul.f32 %v2211_v35, %v474_v30 }
 0x26e   :  { %2463 = vmatprep.mubr.msk.f32.mxu1 %vm326_vm2, %v762_v9  ;;  %v771_v47 = vmax.f32 %v751_v56, 0.0  ;;  %v753_v5 = vadd.f32 %v2230_v44, %v613_v32  ;;  %v615_v43 = vmul.f32 %v2212_v40, %v475_v34 }
 0x26f   :  { %v772_v2 = vmax.f32 %v752_v49, 0.0  ;;  %v754_v45 = vadd.f32 %v2231_v42, %v614_v38 }
 0x270   :  { %v773_v4 = vmax.f32 %v753_v5, 0.0  ;;  %v755_v6 = vadd.f32 %v2232_v3, %v615_v43 }
 0x271   :  { %2464 = vmatmul.mubr.msk.f32.gmra.mrb[16].mxu1 %vm326_vm2, %v763_v15  ;;  %v774_v7 = vmax.f32 %v754_v45, 0.0 }
 0x272   :  { %2466 = vmatprep.mubr.msk.f32.mxu1 %vm326_vm2, %v764_v19  ;;  %v775_v8 = vmax.f32 %v755_v6, 0.0 }
 0x275   :  { %2467 = vmatmul.mubr.msk.f32.gmra.mrb[18].mxu1 %vm326_vm2, %v765_v46 }
 0x276   :  { %2469 = vmatprep.mubr.msk.f32.mxu1 %vm326_vm2, %v766_v54 }
 0x278   :  { %v3147_v9 = vpop.f32.mrb[10].mxu0 }
 0x279   :  { %2470 = vmatmul.mubr.msk.f32.gmra.mrb[20].mxu1 %vm326_vm2, %v767_v23  ;;  %v1681_v50 = vsel %vm326_vm2, %v3147_v9, 0.0  ;;  %v3151_v10 = vpop.f32.mrb[11].mxu0 }
 0x27a   :  { %2472 = vmatprep.mubr.msk.f32.mxu1 %vm326_vm2, %v768_v1  ;;  %v1680_v11 = vsel %vm326_vm2, %v3151_v10, 0.0 }
 0x27b   :  { %v1682_v12 = vadd.f32 %v1681_v50, %v1680_v11 }
 0x27c   :  { %v3155_v13 = vpop.f32.mrb[12].mxu0 }
 0x27d   :  { %2473 = vmatmul.mubr.msk.f32.gmra.mrb[22].mxu1 %vm326_vm2, %v769_v55  ;;  %v3157_v51 = vpop.f32.mrb[13].mxu0  ;;  %v1685_v14 = vsel %vm326_vm2, %v3155_v13, 0.0 }
 0x27e   :  { %2475 = vmatprep.mubr.msk.f32.mxu1 %vm326_vm2, %v770_v37  ;;  %v1683_v15 = vsel %vm326_vm2, %v3157_v51, 0.0 }
 0x27f   :  { %v1684_v16 = vadd.f32 %v1683_v15, %v1682_v12 }
 0x280   :  { %v3163_v17 = vpop.f32.mrb[14].mxu0 }
 0x281   :  { %2476 = vmatmul.mubr.msk.f32.gmra.mrb[24].mxu1 %vm326_vm2, %v771_v47  ;;  %v3165_v18 = vpop.f32.mrb[15].mxu0  ;;  %v1686_v19 = vadd.f32 %v1685_v14, %v1684_v16  ;;  %v1689_v27 = vsel %vm326_vm2, %v3163_v17, 0.0 }
 0x282   :  { %2478 = vmatprep.mubr.msk.f32.mxu1 %vm326_vm2, %v772_v2  ;;  %v1687_v20 = vsel %vm326_vm2, %v3165_v18, 0.0 }
 0x283   :  { %v1688_v58 = vadd.f32 %v1687_v20, %v1686_v19 }
 0x284   :  { %v3171_v59 = vpop.f32.mrb[16].mxu0 }
 0x285   :  { %2479 = vmatmul.mubr.msk.f32.gmra.mrb[26].mxu1 %vm326_vm2, %v773_v4  ;;  %v3173_v60 = vpop.f32.mrb[17].mxu0  ;;  %v1690_v25 = vadd.f32 %v1689_v27, %v1688_v58  ;;  %v1693_v61 = vsel %vm326_vm2, %v3171_v59, 0.0 }
 0x286   :  { %2481 = vmatprep.mubr.msk.f32.mxu1 %vm326_vm2, %v774_v7  ;;  %v1691_v46 = vsel %vm326_vm2, %v3173_v60, 0.0 }
 0x287   :  { %v1692_v48 = vadd.f32 %v1691_v46, %v1690_v25 }
 0x288   :  { %v3179_v52 = vpop.f32.mrb[18].mxu0 }
 0x289   :  { %2482 = vmatmul.mubr.msk.f32.gmra.mrb[28].mxu1 %vm326_vm2, %v775_v8  ;;  %v3181_v53 = vpop.f32.mrb[19].mxu0  ;;  %v1694_v54 = vadd.f32 %v1693_v61, %v1692_v48  ;;  %v1697_v33 = vsel %vm326_vm2, %v3179_v52, 0.0 }
 0x28a   :  { %v1695_v0 = vsel %vm326_vm2, %v3181_v53, 0.0 }
 0x28b   :  { %v1696_v62 = vadd.f32 %v1695_v0, %v1694_v54 }
 0x28c   :  { %v3187_v21 = vpop.f32.mrb[20].mxu0 }
 0x28d   :  { %v3189_v24 = vpop.f32.mrb[21].mxu0  ;;  %v1698_v31 = vadd.f32 %v1697_v33, %v1696_v62  ;;  %v1701_v63 = vsel %vm326_vm2, %v3187_v21, 0.0 }
 0x28e   :  { %v1699_v23 = vsel %vm326_vm2, %v3189_v24, 0.0 }
 0x28f   :  { %v1700_v29 = vadd.f32 %v1699_v23, %v1698_v31 }
 0x290   :  { %v3195_v28 = vpop.f32.mrb[22].mxu0 }
 0x291   :  { %v3197_v57 = vpop.f32.mrb[23].mxu0  ;;  %v1702_v1 = vadd.f32 %v1701_v63, %v1700_v29  ;;  %v1705_v41 = vsel %vm326_vm2, %v3195_v28, 0.0 }
 0x292   :  { %v1703_v22 = vsel %vm326_vm2, %v3197_v57, 0.0 }
 0x293   :  { %v1704_v36 = vadd.f32 %v1703_v22, %v1702_v1 }
 0x294   :  { %v3203_v26 = vpop.f32.mrb[24].mxu0 }
 0x295   :  { %v3205_v30 = vpop.f32.mrb[25].mxu0  ;;  %v1706_v39 = vadd.f32 %v1705_v41, %v1704_v36  ;;  %v1709_v35 = vsel %vm326_vm2, %v3203_v26, 0.0 }
 0x296   :  { %v1707_v55 = vsel %vm326_vm2, %v3205_v30, 0.0 }
 0x297   :  { %v1708_v56 = vadd.f32 %v1707_v55, %v1706_v39 }
 0x298   :  { %v3211_v32 = vpop.f32.mrb[26].mxu0 }
 0x299   :  { %v3213_v34 = vpop.f32.mrb[27].mxu0  ;;  %v1710_v37 = vadd.f32 %v1709_v35, %v1708_v56  ;;  %v1713_v49 = vsel %vm326_vm2, %v3211_v32, 0.0 }
 0x29a   :  { %v1711_v44 = vsel %vm326_vm2, %v3213_v34, 0.0 }
 0x29b   :  { %v1712_v38 = vadd.f32 %v1711_v44, %v1710_v37 }
 0x29c   :  { %v3219_v40 = vpop.f32.mrb[28].mxu0 }
 0x29d   :  { %v3221_v42 = vpop.f32.mrb[29].mxu0  ;;  %v1714_v47 = vadd.f32 %v1713_v49, %v1712_v38  ;;  %v1717_v5 = vsel %vm326_vm2, %v3219_v40, 0.0 }
 0x29e   :  { %v1715_v43 = vsel %vm326_vm2, %v3221_v42, 0.0 }
 0x29f   :  { %v1716_v2 = vadd.f32 %v1715_v43, %v1714_v47 }
 0x2a1   :  { %v1718_v45 = vadd.f32 %v1717_v5, %v1716_v2 }
 0x338   :  { %v3227_v3 = vpop.f32.mrb[10].mxu1 }
 0x339   :  { %v1044_v4 = vsel %vm326_vm2, %v3227_v3, 0.0  ;;  %v3231_v6 = vpop.f32.mrb[11].mxu1 }
 0x33a   :  { %v1043_v7 = vsel %vm326_vm2, %v3231_v6, 0.0 }
 0x33b   :  { %v1045_v8 = vadd.f32 %v1044_v4, %v1043_v7 }
 0x33c   :  { %v3235_v50 = vpop.f32.mrb[12].mxu1 }
 0x33d   :  { %v914_v11 = vpop.f32.mrb[13].mxu1  ;;  %v1048_v15 = vsel %vm326_vm2, %v3235_v50, 0.0 }
 0x33e   :  { %v1046_v12 = vsel %vm326_vm2, %v914_v11, 0.0 }
 0x33f   :  { %v1047_v14 = vadd.f32 %v1046_v12, %v1045_v8 }
 0x340   :  { %v3240_v16 = vpop.f32.mrb[14].mxu1 }
 0x341   :  { %v924_v19 = vpop.f32.mrb[15].mxu1  ;;  %v1049_v27 = vadd.f32 %v1048_v15, %v1047_v14  ;;  %v1052_v25 = vsel %vm326_vm2, %v3240_v16, 0.0 }
 0x342   :  { %v1050_v20 = vsel %vm326_vm2, %v924_v19, 0.0 }
 0x343   :  { %v1051_v58 = vadd.f32 %v1050_v20, %v1049_v27 }
 0x344   :  { %v3245_v61 = vpop.f32.mrb[16].mxu1 }
 0x345   :  { %v934_v46 = vpop.f32.mrb[17].mxu1  ;;  %v1053_v48 = vadd.f32 %v1052_v25, %v1051_v58  ;;  %v1056_v0 = vsel %vm326_vm2, %v3245_v61, 0.0 }
 0x346   :  { %v1054_v54 = vsel %vm326_vm2, %v934_v46, 0.0 }
 0x347   :  { %v1055_v33 = vadd.f32 %v1054_v54, %v1053_v48 }
 0x348   :  { %v3250_v62 = vpop.f32.mrb[18].mxu1 }
 0x349   :  { %v3252_v31 = vpop.f32.mrb[19].mxu1  ;;  %v1057_v63 = vadd.f32 %v1056_v0, %v1055_v33  ;;  %v1060_v1 = vsel %vm326_vm2, %v3250_v62, 0.0 }
 0x34a   :  { %v1058_v23 = vsel %vm326_vm2, %v3252_v31, 0.0 }
 0x34b   :  { %v1059_v29 = vadd.f32 %v1058_v23, %v1057_v63 }
 0x34c   :  { %v3258_v41 = vpop.f32.mrb[20].mxu1 }
 0x34d   :  { %v3260_v22 = vpop.f32.mrb[21].mxu1  ;;  %v1061_v36 = vadd.f32 %v1060_v1, %v1059_v29  ;;  %v1064_v55 = vsel %vm326_vm2, %v3258_v41, 0.0  ;;  %v1719_v1 = vsel %vm326_vm2, %v1718_v45, 0.0 }
 0x34e   :  { %v1062_v39 = vsel %vm326_vm2, %v3260_v22, 0.0 }
 0x34f   :  { %v1063_v35 = vadd.f32 %v1062_v39, %v1061_v36 }
 0x350   :  { %v3266_v56 = vpop.f32.mrb[22].mxu1 }
 0x351   :  { %v3268_v37 = vpop.f32.mrb[23].mxu1  ;;  %v1065_v49 = vadd.f32 %v1064_v55, %v1063_v35  ;;  %v1068_v47 = vsel %vm326_vm2, %v3266_v56, 0.0 }
 0x352   :  { %v1066_v44 = vsel %vm326_vm2, %v3268_v37, 0.0 }
 0x353   :  { %v1067_v38 = vadd.f32 %v1066_v44, %v1065_v49 }
 0x354   :  { %v3274_v5 = vpop.f32.mrb[24].mxu1 }
 0x355   :  { %v3276_v43 = vpop.f32.mrb[25].mxu1  ;;  %v1069_v2 = vadd.f32 %v1068_v47, %v1067_v38  ;;  %v1072_v8 = vsel %vm326_vm2, %v3274_v5, 0.0 }
 0x356   :  { %v1070_v4 = vsel %vm326_vm2, %v3276_v43, 0.0 }
 0x357   :  { %v1071_v7 = vadd.f32 %v1070_v4, %v1069_v2 }
 0x358   :  { %v3282_v12 = vpop.f32.mrb[26].mxu1 }
 0x359   :  { %v3284_v14 = vpop.f32.mrb[27].mxu1  ;;  %v1073_v15 = vadd.f32 %v1072_v8, %v1071_v7  ;;  %v1076_v58 = vsel %vm326_vm2, %v3282_v12, 0.0 }
 0x35a   :  { %v1074_v27 = vsel %vm326_vm2, %v3284_v14, 0.0 }
 0x35b   :  { %v1075_v20 = vadd.f32 %v1074_v27, %v1073_v15 }
 0x35c   :  { %v3290_v25 = vpop.f32.mrb[28].mxu1 }
 0x35d   :  { %v3292_v48 = vpop.f32.mrb[29].mxu1  ;;  %v1077_v54 = vadd.f32 %v1076_v58, %v1075_v20  ;;  %v1080_v63 = vsel %vm326_vm2, %v3290_v25, 0.0 }
 0x35e   :  { %v1078_v33 = vsel %vm326_vm2, %v3292_v48, 0.0 }
 0x35f   :  { %v1079_v0 = vadd.f32 %v1078_v33, %v1077_v54 }
 0x361   :  { %v1081_v23 = vadd.f32 %v1080_v63, %v1079_v0 }
 0x363   :  { %v1082_v29 = vsel %vm326_vm2, %v1081_v23, 0.0 }
 0x364   :  { %1083 = vadd.xlane.f32.xlu1 %v1082_v29 }
 0x368   :  { %1720 = vadd.xlane.f32.xlu1 %v1719_v1 }
 0x3f1   :  { %v1084_v36 = vpop.xlane.xlu1 %1083 }
 0x3f2   :  { %v3300_v39 = vmul.f32 0.003125, %v1084_v36 }
 0x3f4   :  { %v3304_v35 = vsub.f32 %v3231_v6, %v3300_v39  ;;  %v3308_v55 = vsub.f32 %v3227_v3, %v3300_v39  ;;  %v3311_v49 = vsub.f32 %v914_v11, %v3300_v39  ;;  %v3315_v44 = vsub.f32 %v3235_v50, %v3300_v39 }
 0x3f5   :  { %v3322_v6 = vsub.f32 %v924_v19, %v3300_v39  ;;  %v3328_v11 = vsub.f32 %v3240_v16, %v3300_v39  ;;  %v1721_v7 = vpop.xlane.xlu1 %1720  ;;  %v3335_v8 = vsub.f32 %v934_v46, %v3300_v39  ;;  %v3342_v16 = vsub.f32 %v3245_v61, %v3300_v39 }
 0x3f6   :  { %v1106_v45 = vmul.f32 %v3304_v35, %v3304_v35  ;;  %v1107_v38 = vmul.f32 %v3308_v55, %v3308_v55  ;;  %v1108_v3 = vmul.f32 %v3311_v49, %v3311_v49  ;;  %v1109_v50 = vmul.f32 %v3315_v44, %v3315_v44 }
 0x3f7   :  { %v1110_v19 = vmul.f32 %v3322_v6, %v3322_v6  ;;  %v1111_v20 = vmul.f32 %v3328_v11, %v3328_v11  ;;  %v3347_v54 = vmul.f32 0.003125, %v1721_v7  ;;  %v3351_v46 = vsub.f32 %v3252_v31, %v3300_v39 }
 0x3f8   :  { %v1126_v47 = vsel %vm326_vm2, %v1106_v45, 0.0  ;;  %v1127_v2 = vsel %vm326_vm2, %v1107_v38, 0.0  ;;  %v1129_v15 = vsel %vm326_vm2, %v1108_v3, 0.0  ;;  %v1131_v58 = vsel %vm326_vm2, %v1109_v50, 0.0 }
 0x3f9   :  { %v1128_v4 = vadd.f32 %v1127_v2, %v1126_v47  ;;  %v1112_v0 = vmul.f32 %v3335_v8, %v3335_v8  ;;  %v1133_v63 = vsel %vm326_vm2, %v1110_v19, 0.0  ;;  %v3358_v61 = vsub.f32 %v3250_v62, %v3300_v39 }
 0x3fa   :  { %v1113_v29 = vmul.f32 %v3342_v16, %v3342_v16  ;;  %v1135_v1 = vsel %vm326_vm2, %v1111_v20, 0.0  ;;  %v3365_v31 = vsub.f32 %v3151_v10, %v3347_v54  ;;  %v3369_v45 = vsub.f32 %v3147_v9, %v3347_v54 }
 0x3fb   :  { %v1130_v27 = vadd.f32 %v1129_v15, %v1128_v4  ;;  %v3373_v38 = vsub.f32 %v3260_v22, %v3300_v39  ;;  %v1114_v62 = vmul.f32 %v3351_v46, %v3351_v46  ;;  %v1137_v3 = vsel %vm326_vm2, %v1112_v0, 0.0 }
 0x3fc   :  { %v3380_v47 = vsub.f32 %v3157_v51, %v3347_v54  ;;  %v3384_v10 = vsub.f32 %v3258_v41, %v3300_v39  ;;  %v1115_v9 = vmul.f32 %v3358_v61, %v3358_v61  ;;  %v1139_v22 = vsel %vm326_vm2, %v1113_v29, 0.0 }
 0x3fd   :  { %v1132_v33 = vadd.f32 %v1131_v58, %v1130_v27  ;;  %v3391_v4 = vsub.f32 %v3155_v13, %v3347_v54  ;;  %v1743_v7 = vmul.f32 %v3365_v31, %v3365_v31  ;;  %v1744_v51 = vmul.f32 %v3369_v45, %v3369_v45 }
 0x3fe   :  { %v3399_v41 = vsub.f32 %v3268_v37, %v3300_v39  ;;  %v1116_v19 = vmul.f32 %v3373_v38, %v3373_v38  ;;  %v1141_v15 = vsel %vm326_vm2, %v1114_v62, 0.0  ;;  %v3406_v13 = vsub.f32 %v3165_v18, %v3347_v54 }
 0x3ff   :  { %v1134_v23 = vadd.f32 %v1133_v63, %v1132_v33  ;;  %v1745_v20 = vmul.f32 %v3380_v47, %v3380_v47  ;;  %v3412_v58 = vsub.f32 %v3266_v56, %v3300_v39  ;;  %v1117_v37 = vmul.f32 %v3384_v10, %v3384_v10 }
 0x400   :  { %v1143_v33 = vsel %vm326_vm2, %v1115_v9, 0.0  ;;  %v3419_v0 = vsub.f32 %v3163_v17, %v3347_v54  ;;  %v1746_v18 = vmul.f32 %v3391_v4, %v3391_v4  ;;  %v1764_v29 = vsel %vm326_vm2, %v1744_v51, 0.0 }
 0x401   :  { %v1136_v36 = vadd.f32 %v1135_v1, %v1134_v23  ;;  %v1763_v23 = vsel %vm326_vm2, %v1743_v7, 0.0  ;;  %v3427_v56 = vsub.f32 %v3276_v43, %v3300_v39  ;;  %v1118_v1 = vmul.f32 %v3399_v41, %v3399_v41 }
 0x402   :  { %v1765_v62 = vadd.f32 %v1764_v29, %v1763_v23  ;;  %v1766_v9 = vsel %vm326_vm2, %v1745_v20, 0.0  ;;  %v3441_v43 = vsub.f32 %v3274_v5, %v3300_v39  ;;  %v3455_v5 = vsub.f32 %v3284_v14, %v3300_v39 }
 0x403   :  { %v1138_v50 = vadd.f32 %v1137_v3, %v1136_v36  ;;  %v1145_v36 = vsel %vm326_vm2, %v1116_v19, 0.0  ;;  %v3434_v3 = vsub.f32 %v3173_v60, %v3347_v54  ;;  %v3448_v60 = vsub.f32 %v3171_v59, %v3347_v54 }
 0x404   :  { %v1767_v7 = vadd.f32 %v1766_v9, %v1765_v62  ;;  %v1748_v19 = vmul.f32 %v3419_v0, %v3419_v0  ;;  %v1149_v20 = vsel %vm326_vm2, %v1118_v1, 0.0  ;;  %v3462_v59 = vsub.f32 %v3181_v53, %v3347_v54 }
 0x405   :  { %v1140_v2 = vadd.f32 %v1139_v22, %v1138_v50  ;;  %v1747_v50 = vmul.f32 %v3406_v13, %v3406_v13  ;;  %v1119_v22 = vmul.f32 %v3412_v58, %v3412_v58  ;;  %v3469_v14 = vsub.f32 %v3282_v12, %v3300_v39 }
 0x406   :  { %v1121_v23 = vmul.f32 %v3441_v43, %v3441_v43  ;;  %v3476_v53 = vsub.f32 %v3179_v52, %v3347_v54  ;;  %v1750_v62 = vmul.f32 %v3448_v60, %v3448_v60  ;;  %v3483_v12 = vsub.f32 %v3292_v48, %v3300_v39 }
 0x407   :  { %v1142_v27 = vadd.f32 %v1141_v15, %v1140_v2  ;;  %v1147_v2 = vsel %vm326_vm2, %v1117_v37, 0.0  ;;  %v1768_v15 = vsel %vm326_vm2, %v1746_v18, 0.0  ;;  %v1770_v18 = vsel %vm326_vm2, %v1747_v50, 0.0 }
 0x408   :  { %v1769_v37 = vadd.f32 %v1768_v15, %v1767_v7  ;;  %v1151_v29 = vsel %vm326_vm2, %v1119_v22, 0.0  ;;  %v1122_v50 = vmul.f32 %v3455_v5, %v3455_v5  ;;  %v3490_v52 = vsub.f32 %v3189_v24, %v3347_v54 }
 0x409   :  { %v1144_v63 = vadd.f32 %v1143_v33, %v1142_v27  ;;  %v1120_v27 = vmul.f32 %v3427_v56, %v3427_v56  ;;  %v1751_v7 = vmul.f32 %v3462_v59, %v3462_v59  ;;  %v3497_v48 = vsub.f32 %v3290_v25, %v3300_v39 }
 0x40a   :  { %v1771_v1 = vadd.f32 %v1770_v18, %v1769_v37  ;;  %v1155_v15 = vsel %vm326_vm2, %v1121_v23, 0.0  ;;  %v3504_v24 = vsub.f32 %v3187_v21, %v3347_v54  ;;  %v1752_v37 = vmul.f32 %v3476_v53, %v3476_v53 }
 0x40b   :  { %v1146_v17 = vadd.f32 %v1145_v36, %v1144_v63  ;;  %v1749_v63 = vmul.f32 %v3434_v3, %v3434_v3  ;;  %v1153_v9 = vsel %vm326_vm2, %v1120_v27, 0.0  ;;  %v1124_v25 = vmul.f32 %v3483_v12, %v3483_v12 }
 0x40c   :  { %4023 = vst [vmem:[#allocation2_spill] sm:$0xff] %v3504_v24  ;;  %v1157_v39 = vsel %vm326_vm2, %v1122_v50, 0.0  ;;  %v3514_v23 = vsub.f32 %v3197_v57, %v3347_v54  ;;  %v1753_v21 = vmul.f32 %v3490_v52, %v3490_v52  ;;  %v3524_v50 = vsub.f32 %v3195_v28, %v3347_v54 }
 0x40d   :  { %v1148_v51 = vadd.f32 %v1147_v2, %v1146_v17  ;;  %v1772_v17 = vsel %vm326_vm2, %v1748_v19, 0.0  ;;  %v1123_v19 = vmul.f32 %v3469_v14, %v3469_v14  ;;  %v1754_v57 = vmul.f32 %v3504_v24, %v3504_v24 }
 0x40e   :  { %v1773_v22 = vadd.f32 %v1772_v17, %v1771_v1  ;;  %4024 = vst [vmem:[#allocation3_spill] sm:$0xff] %v3514_v23  ;;  %v1125_v1 = vmul.f32 %v3497_v48, %v3497_v48  ;;  %4025 = vst [vmem:[#allocation4_spill] sm:$0xff] %v3524_v50 }
 0x40f   :  { %v1150_v33 = vadd.f32 %v1149_v20, %v1148_v51  ;;  %v1774_v51 = vsel %vm326_vm2, %v1749_v63, 0.0 }
 0x410   :  { %v1775_v27 = vadd.f32 %v1774_v51, %v1773_v22  ;;  %v1161_v22 = vsel %vm326_vm2, %v1124_v25, 0.0  ;;  %v3532_v51 = vsub.f32 %v3205_v30, %v3347_v54  ;;  %v1163_v28 = vsel %vm326_vm2, %v1125_v1, 0.0 }
 0x411   :  { %v1152_v36 = vadd.f32 %v1151_v29, %v1150_v33  ;;  %v1776_v33 = vsel %vm326_vm2, %v1750_v62, 0.0  ;;  %v1778_v29 = vsel %vm326_vm2, %v1751_v7, 0.0  ;;  %v1784_v25 = vsel %vm326_vm2, %v1754_v57, 0.0 }
 0x412   :  { %v1777_v63 = vadd.f32 %v1776_v33, %v1775_v27  ;;  %4026 = vst [vmem:[#allocation5_spill] sm:$0xff] %v3532_v51  ;;  %v1756_v33 = vmul.f32 %v3524_v50, %v3524_v50 }
 0x413   :  { %v1154_v2 = vadd.f32 %v1153_v9, %v1152_v36  ;;  %v1159_v36 = vsel %vm326_vm2, %v1123_v19, 0.0  ;;  %v1780_v9 = vsel %vm326_vm2, %v1752_v37, 0.0  ;;  %v1755_v19 = vmul.f32 %v3514_v23, %v3514_v23 }
 0x414   :  { %v1779_v62 = vadd.f32 %v1778_v29, %v1777_v63  ;;  %v3540_v37 = vsub.f32 %v3203_v26, %v3347_v54  ;;  %v3548_v63 = vsub.f32 %v3213_v34, %v3347_v54  ;;  %v3555_v29 = vsub.f32 %v3211_v32, %v3347_v54 }
 0x415   :  { %v1156_v20 = vadd.f32 %v1155_v15, %v1154_v2  ;;  %v1782_v15 = vsel %vm326_vm2, %v1753_v21, 0.0  ;;  %v1786_v21 = vsel %vm326_vm2, %v1755_v19, 0.0  ;;  %v3562_v34 = vsub.f32 %v3221_v42, %v3347_v54 }
 0x416   :  { %v1781_v2 = vadd.f32 %v1780_v9, %v1779_v62  ;;  %4027 = vst [vmem:[#allocation6_spill] sm:$0xff] %v3540_v37  ;;  %4028 = vst [vmem:[#allocation7_spill] sm:$0xff] %v3548_v63  ;;  %v1758_v1 = vmul.f32 %v3540_v37, %v3540_v37  ;;  %v3569_v32 = vsub.f32 %v3219_v40, %v3347_v54 }
 0x417   :  { %v1158_v18 = vadd.f32 %v1157_v39, %v1156_v20  ;;  %4029 = vst [vmem:[#allocation8_spill] sm:$0xff] %v3555_v29  ;;  %4030 = vst [vmem:[#allocation9_spill] sm:$0xff] %v3562_v34  ;;  %v1761_v42 = vmul.f32 %v3562_v34, %v3562_v34  ;;  %v2273_v34 = vld [vmem:[%s4010_s6] ss:$0 sm:$0xff] }
 0x418   :  { %v1783_v27 = vadd.f32 %v1782_v15, %v1781_v2  ;;  %4031 = vst [vmem:[#allocation10_spill] sm:$0xff] %v3569_v32  ;;  %v1792_v2 = vsel %vm326_vm2, %v1758_v1, 0.0 }
 0x419   :  { %v1160_v17 = vadd.f32 %v1159_v36, %v1158_v18  ;;  %v1757_v18 = vmul.f32 %v3532_v51, %v3532_v51  ;;  %v1788_v36 = vsel %vm326_vm2, %v1756_v33, 0.0  ;;  %v1798_v40 = vsel %vm326_vm2, %v1761_v42, 0.0  ;;  %v2257_v42 = vld [vmem:[%s4009_s5 + $0x4] ss:$0 sm:$0xff] }
 0x41a   :  { %v1785_v30 = vadd.f32 %v1784_v25, %v1783_v27 }
 0x41b   :  { %v1162_v7 = vadd.f32 %v1161_v22, %v1160_v17  ;;  %v1759_v17 = vmul.f32 %v3548_v63, %v3548_v63  ;;  %v1790_v57 = vsel %vm326_vm2, %v1757_v18, 0.0  ;;  %v1760_v22 = vmul.f32 %v3555_v29, %v3555_v29  ;;  %v2274_v29 = vld [vmem:[%s4010_s6 + $0x1] ss:$0 sm:$0xff] }
 0x41c   :  { %v1787_v26 = vadd.f32 %v1786_v21, %v1785_v30 }
 0x41d   :  { %v1164_v20 = vadd.f32 %v1163_v28, %v1162_v7  ;;  %v1794_v19 = vsel %vm326_vm2, %v1759_v17, 0.0  ;;  %v1762_v28 = vmul.f32 %v3569_v32, %v3569_v32  ;;  %v1796_v27 = vsel %vm326_vm2, %v1760_v22, 0.0  ;;  %v2255_v22 = vld [vmem:[%s4009_s5 + $0x2] ss:$0 sm:$0xff]  ;;  %v2271_v32 = vld [vmem:[%s4009_s5 + $0x12] ss:$0 sm:$0xff] }
 0x41e   :  { %v1789_v62 = vadd.f32 %v1788_v36, %v1787_v26 }
 0x41f   :  { %v1165_v39 = vsel %vm326_vm2, %v1164_v20, 0.0  ;;  %v1800_v33 = vsel %vm326_vm2, %v1762_v28, 0.0 }
 0x420   :  { %1166 = vadd.xlane.f32.xlu0 %v1165_v39  ;;  %v1791_v9 = vadd.f32 %v1790_v57, %v1789_v62  ;;  %v2253_v57 = vld [vmem:[%s4009_s5] ss:$0 sm:$0xff] }
 0x422   :  { %v1793_v7 = vadd.f32 %v1792_v2, %v1791_v9  ;;  %v2254_v9 = vld [vmem:[%s4009_s5 + $0x1] ss:$0 sm:$0xff] }
 0x424   :  { %v1795_v15 = vadd.f32 %v1794_v19, %v1793_v7  ;;  %v2258_v19 = vld [vmem:[%s4009_s5 + $0x5] ss:$0 sm:$0xff] }
 0x426   :  { %v1797_v20 = vadd.f32 %v1796_v27, %v1795_v15  ;;  %v2259_v15 = vld [vmem:[%s4009_s5 + $0x6] ss:$0 sm:$0xff] }
 0x428   :  { %v1799_v54 = vadd.f32 %v1798_v40, %v1797_v20  ;;  %v2261_v20 = vld [vmem:[%s4009_s5 + $0x8] ss:$0 sm:$0xff]  ;;  %v2262_v40 = vld [vmem:[%s4009_s5 + $0x9] ss:$0 sm:$0xff] }
 0x42a   :  { %v1801_v25 = vadd.f32 %v1800_v33, %v1799_v54  ;;  %v2263_v54 = vld [vmem:[%s4009_s5 + $0xa] ss:$0 sm:$0xff] }
 0x42c   :  { %v1802_v30 = vsel %vm326_vm2, %v1801_v25, 0.0  ;;  %v2265_v25 = vld [vmem:[%s4009_s5 + $0xc] ss:$0 sm:$0xff] }
 0x42d   :  { %1803 = vadd.xlane.f32.xlu1 %v1802_v30  ;;  %v2266_v30 = vld [vmem:[%s4009_s5 + $0xd] ss:$0 sm:$0xff] }
 0x4ad   :  { %v1167_v39 = vpop.xlane.xlu0 %1166 }
 0x4ae   :  { %v1168_v18 = vmul.f32 0.003125, %v1167_v39  ;;  %v2267_v39 = vld [vmem:[%s4009_s5 + $0xe] ss:$0 sm:$0xff] }
 0x4b0   :  { %v1169_v21 = vadd.f32 1e-05, %v1168_v18 }
 0x4b2   :  { %2524 = vrsqrt.f32 %v1169_v21 }
 0x4ba   :  { %v1804_v1 = vpop.xlane.xlu1 %1803 }
 0x4bb   :  { %v1805_v7 = vmul.f32 0.003125, %v1804_v1  ;;  %v2269_v1 = vld [vmem:[%s4009_s5 + $0x10] ss:$0 sm:$0xff] }
 0x4bc   :  { %v2525_v26 = vpop.eup %2524 }
 0x4bd   :  { %v1171_v36 = vmul.f32 %v2525_v26, %v3304_v35  ;;  %v1172_v62 = vmul.f32 %v2525_v26, %v3308_v55  ;;  %v1173_v17 = vmul.f32 %v2525_v26, %v3311_v49  ;;  %v2256_v35 = vld [vmem:[%s4009_s5 + $0x3] ss:$0 sm:$0xff]  ;;  %v1174_v55 = vmul.f32 %v2525_v26, %v3315_v44  ;;  %v2260_v44 = vld [vmem:[%s4009_s5 + $0x7] ss:$0 sm:$0xff] }
 0x4be   :  { %v1175_v49 = vmul.f32 %v2525_v26, %v3322_v6  ;;  %v1176_v2 = vmul.f32 %v2525_v26, %v3328_v11  ;;  %v1177_v6 = vmul.f32 %v2525_v26, %v3335_v8  ;;  %v1178_v11 = vmul.f32 %v2525_v26, %v3342_v16  ;;  %v2264_v8 = vld [vmem:[%s4009_s5 + $0xb] ss:$0 sm:$0xff] }
 0x4bf   :  { %v1179_v28 = vmul.f32 %v2525_v26, %v3351_v46  ;;  %v1180_v27 = vmul.f32 %v2525_v26, %v3358_v61  ;;  %v1181_v16 = vmul.f32 %v2525_v26, %v3373_v38  ;;  %v1182_v46 = vmul.f32 %v2525_v26, %v3384_v10  ;;  %v2268_v38 = vld [vmem:[%s4009_s5 + $0xf] ss:$0 sm:$0xff] }
 0x4c0   :  { %v1183_v61 = vmul.f32 %v2525_v26, %v3399_v41  ;;  %v1806_v33 = vadd.f32 1e-05, %v1805_v7  ;;  %v1184_v10 = vmul.f32 %v2525_v26, %v3412_v58  ;;  %v1185_v41 = vmul.f32 %v2525_v26, %v3427_v56  ;;  %v2270_v7 = vld [vmem:[%s4009_s5 + $0x11] ss:$0 sm:$0xff] }
 0x4c1   :  { %v1186_v18 = vmul.f32 %v2525_v26, %v3441_v43  ;;  %v1187_v21 = vmul.f32 %v2525_v26, %v3455_v5  ;;  %v1188_v58 = vmul.f32 %v2525_v26, %v3469_v14  ;;  %v1189_v56 = vmul.f32 %v2525_v26, %v3483_v12  ;;  %v2272_v5 = vld [vmem:[%s4009_s5 + $0x13] ss:$0 sm:$0xff]  ;;  %v2275_v12 = vld [vmem:[%s4010_s6 + $0x2] ss:$0 sm:$0xff] }
 0x4c2   :  { %v1190_v43 = vmul.f32 %v2525_v26, %v3497_v48  ;;  %2526 = vrsqrt.f32 %v1806_v33  ;;  %v1311_v63 = vmul.f32 %v2253_v57, %v1171_v36  ;;  %v1312_v37 = vmul.f32 %v2254_v9, %v1172_v62  ;;  %v2276_v48 = vld [vmem:[%s4010_s6 + $0x3] ss:$0 sm:$0xff]  ;;  %v2277_v26 = vld [vmem:[%s4010_s6 + $0x4] ss:$0 sm:$0xff]  ;;  %v2278_v36 = vld [vmem:[%s4010_s6 + $0x5] ss:$0 sm:$0xff] }
 0x4c3   :  { %v1313_v14 = vmul.f32 %v2255_v22, %v1173_v17  ;;  %v1314_v51 = vmul.f32 %v2256_v35, %v1174_v55  ;;  %v1315_v33 = vmul.f32 %v2257_v42, %v1175_v49  ;;  %v1316_v50 = vmul.f32 %v2258_v19, %v1176_v2  ;;  %v2279_v62 = vld [vmem:[%s4010_s6 + $0x6] ss:$0 sm:$0xff]  ;;  %v2280_v17 = vld [vmem:[%s4010_s6 + $0x7] ss:$0 sm:$0xff]  ;;  %v2281_v55 = vld [vmem:[%s4010_s6 + $0x8] ss:$0 sm:$0xff] }
 0x4c4   :  { %v1317_v23 = vmul.f32 %v2259_v15, %v1177_v6  ;;  %v1318_v24 = vmul.f32 %v2260_v44, %v1178_v11  ;;  %v1319_v57 = vmul.f32 %v2261_v20, %v1179_v28  ;;  %v1320_v9 = vmul.f32 %v2262_v40, %v1180_v27  ;;  %v2282_v49 = vld [vmem:[%s4010_s6 + $0x9] ss:$0 sm:$0xff]  ;;  %v2283_v2 = vld [vmem:[%s4010_s6 + $0xa] ss:$0 sm:$0xff]  ;;  %v2284_v6 = vld [vmem:[%s4010_s6 + $0xb] ss:$0 sm:$0xff] }
 0x4c5   :  { %v1321_v22 = vmul.f32 %v2263_v54, %v1181_v16  ;;  %v1322_v35 = vmul.f32 %v2264_v8, %v1182_v46  ;;  %v1323_v42 = vmul.f32 %v2265_v25, %v1183_v61  ;;  %v1324_v19 = vmul.f32 %v2266_v30, %v1184_v10  ;;  %v2285_v11 = vld [vmem:[%s4010_s6 + $0xc] ss:$0 sm:$0xff]  ;;  %v2286_v28 = vld [vmem:[%s4010_s6 + $0xd] ss:$0 sm:$0xff]  ;;  %v2287_v8 = vld [vmem:[%s4010_s6 + $0xe] ss:$0 sm:$0xff] }
 0x4c6   :  { %v1325_v15 = vmul.f32 %v2267_v39, %v1185_v41  ;;  %v1326_v44 = vmul.f32 %v2268_v38, %v1186_v18  ;;  %v1327_v27 = vmul.f32 %v2269_v1, %v1187_v21  ;;  %v1328_v20 = vmul.f32 %v2270_v7, %v1188_v58  ;;  %v2288_v16 = vld [vmem:[%s4010_s6 + $0xf] ss:$0 sm:$0xff]  ;;  %v2289_v46 = vld [vmem:[%s4010_s6 + $0x10] ss:$0 sm:$0xff]  ;;  %v2290_v39 = vld [vmem:[%s4010_s6 + $0x11] ss:$0 sm:$0xff] }
 0x4c7   :  { %v1329_v40 = vmul.f32 %v2271_v32, %v1189_v56  ;;  %v1330_v54 = vmul.f32 %v2272_v5, %v1190_v43  ;;  %v3714_v61 = vadd.f32 %v2273_v34, %v1311_v63  ;;  %v3716_v25 = vadd.f32 %v2274_v29, %v1312_v37  ;;  %v2291_v38 = vld [vmem:[%s4010_s6 + $0x12] ss:$0 sm:$0xff]  ;;  %v2292_v10 = vld [vmem:[%s4010_s6 + $0x13] ss:$0 sm:$0xff] }
 0x4c8   :  { %v3718_v30 = vadd.f32 %v2275_v12, %v1313_v14  ;;  %v3720_v32 = vadd.f32 %v2276_v48, %v1314_v51  ;;  %v3731_v63 = vadd.f32 %v2277_v26, %v1315_v33  ;;  %v3733_v37 = vadd.f32 %v2278_v36, %v1316_v50  ;;  %v2314_v14 = vld [vmem:[%s4011_s8] ss:$0 sm:$0xff]  ;;  %v2315_v12 = vld [vmem:[%s4011_s8 + $0x1] ss:$0 sm:$0xff]  ;;  %v2316_v48 = vld [vmem:[%s4011_s8 + $0x2] ss:$0 sm:$0xff] }
 0x4c9   :  { %v3735_v29 = vadd.f32 %v2279_v62, %v1317_v23  ;;  %v3737_v51 = vadd.f32 %v2280_v17, %v1318_v24  ;;  %v3739_v34 = vadd.f32 %v2281_v55, %v1319_v57  ;;  %v3741_v41 = vadd.f32 %v2282_v49, %v1320_v9  ;;  %v2317_v26 = vld [vmem:[%s4011_s8 + $0x3] ss:$0 sm:$0xff]  ;;  %v2318_v57 = vld [vmem:[%s4011_s8 + $0x4] ss:$0 sm:$0xff]  ;;  %v2319_v9 = vld [vmem:[%s4011_s8 + $0x5] ss:$0 sm:$0xff] }
 0x4ca   :  { %v3743_v18 = vadd.f32 %v2283_v2, %v1321_v22  ;;  %v3745_v21 = vadd.f32 %v2284_v6, %v1322_v35  ;;  %v3747_v1 = vadd.f32 %v2285_v11, %v1323_v42  ;;  %v3749_v7 = vadd.f32 %v2286_v28, %v1324_v19  ;;  %v2320_v22 = vld [vmem:[%s4011_s8 + $0x6] ss:$0 sm:$0xff]  ;;  %v2322_v55 = vld [vmem:[%s4011_s8 + $0x8] ss:$0 sm:$0xff]  ;;  %v2323_v49 = vld [vmem:[%s4011_s8 + $0x9] ss:$0 sm:$0xff] }
 0x4cb   :  { %v3751_v58 = vadd.f32 %v2287_v8, %v1325_v15  ;;  %v3753_v50 = vadd.f32 %v2288_v16, %v1326_v44  ;;  %v3755_v56 = vadd.f32 %v2289_v46, %v1327_v27  ;;  %v3757_v24 = vadd.f32 %v2290_v39, %v1328_v20  ;;  %v2324_v2 = vld [vmem:[%s4011_s8 + $0xa] ss:$0 sm:$0xff]  ;;  %v4042_v42 = vld [vmem:[#allocation2_spill] sm:$0xff]  ;;  %v2326_v15 = vld [vmem:[%s4011_s8 + $0xc] ss:$0 sm:$0xff] }
 0x4cc   :  { %4032 = vst [vmem:[#allocation11_spill] sm:$0xff] %v3743_v18  ;;  %4033 = vst [vmem:[#allocation12_spill] sm:$0xff] %v3745_v21  ;;  %v2527_v23 = vpop.eup %2526  ;;  %v3759_v43 = vadd.f32 %v2291_v38, %v1329_v40  ;;  %v3761_v5 = vadd.f32 %v2292_v10, %v1330_v54  ;;  %v2327_v44 = vld [vmem:[%s4011_s8 + $0xd] ss:$0 sm:$0xff]  ;;  %v2328_v6 = vld [vmem:[%s4011_s8 + $0xe] ss:$0 sm:$0xff] }
 0x4cd   :  { %4034 = vst [vmem:[#allocation13_spill] sm:$0xff] %v3747_v1  ;;  %4035 = vst [vmem:[#allocation14_spill] sm:$0xff] %v3749_v7  ;;  %v1808_v33 = vmul.f32 %v2527_v23, %v3365_v31  ;;  %v1809_v36 = vmul.f32 %v2527_v23, %v3369_v45  ;;  %v1810_v62 = vmul.f32 %v2527_v23, %v3380_v47  ;;  %v2321_v31 = vld [vmem:[%s4011_s8 + $0x7] ss:$0 sm:$0xff]  ;;  %v4044_v11 = vld [vmem:[#allocation4_spill] sm:$0xff] }
 0x4ce   :  { %4036 = vst [vmem:[#allocation15_spill] sm:$0xff] %v3751_v58  ;;  %4037 = vst [vmem:[#allocation16_spill] sm:$0xff] %v3753_v50  ;;  %v1811_v17 = vmul.f32 %v2527_v23, %v3391_v4  ;;  %v1812_v45 = vmul.f32 %v2527_v23, %v3406_v13  ;;  %v1813_v47 = vmul.f32 %v2527_v23, %v3419_v0  ;;  %v2325_v13 = vld [vmem:[%s4011_s8 + $0xb] ss:$0 sm:$0xff]  ;;  %v4045_v27 = vld [vmem:[#allocation5_spill] sm:$0xff] }
 0x4cf   :  { %4038 = vst [vmem:[#allocation17_spill] sm:$0xff] %v3755_v56  ;;  %4039 = vst [vmem:[#allocation18_spill] sm:$0xff] %v3757_v24  ;;  %v1814_v4 = vmul.f32 %v2527_v23, %v3434_v3  ;;  %v1815_v35 = vmul.f32 %v2527_v23, %v3448_v60  ;;  %v1816_v0 = vmul.f32 %v2527_v23, %v3462_v59  ;;  %v2329_v59 = vld [vmem:[%s4011_s8 + $0xf] ss:$0 sm:$0xff]  ;;  %v4046_v40 = vld [vmem:[#allocation6_spill] sm:$0xff] }
 0x4d0   :  { %4040 = vst [vmem:[#allocation19_spill] sm:$0xff] %v3759_v43  ;;  %4041 = vst [vmem:[#allocation20_spill] sm:$0xff] %v3761_v5  ;;  %v1817_v3 = vmul.f32 %v2527_v23, %v3476_v53  ;;  %v1818_v60 = vmul.f32 %v2527_v23, %v3490_v52  ;;  %v1819_v19 = vmul.f32 %v2527_v23, %v4042_v42  ;;  %v4043_v53 = vld [vmem:[#allocation3_spill] sm:$0xff]  ;;  %v2330_v8 = vld [vmem:[%s4011_s8 + $0x10] ss:$0 sm:$0xff] }
 0x4d1   :  { %v1820_v52 = vmul.f32 %v2527_v23, %v4043_v53  ;;  %v1821_v28 = vmul.f32 %v2527_v23, %v4044_v11  ;;  %v1822_v20 = vmul.f32 %v2527_v23, %v4045_v27  ;;  %v1823_v54 = vmul.f32 %v2527_v23, %v4046_v40  ;;  %v2331_v16 = vld [vmem:[%s4011_s8 + $0x11] ss:$0 sm:$0xff]  ;;  %v2332_v46 = vld [vmem:[%s4011_s8 + $0x12] ss:$0 sm:$0xff]  ;;  %v4047_v39 = vld [vmem:[#allocation7_spill] sm:$0xff] }
 0x4d2   :  { %v1824_v38 = vmul.f32 %v2527_v23, %v4047_v39  ;;  %v4048_v10 = vld [vmem:[#allocation8_spill] sm:$0xff]  ;;  %v4049_v53 = vld [vmem:[#allocation9_spill] sm:$0xff]  ;;  %v4050_v27 = vld [vmem:[#allocation10_spill] sm:$0xff]  ;;  %v1948_v56 = vmul.f32 %v2314_v14, %v1808_v33  ;;  %v1949_v39 = vmul.f32 %v2315_v12, %v1809_v36  ;;  %v1950_v50 = vmul.f32 %v2316_v48, %v1810_v62 }
 0x4d3   :  { %v1825_v42 = vmul.f32 %v2527_v23, %v4048_v10  ;;  %v1826_v11 = vmul.f32 %v2527_v23, %v4049_v53  ;;  %v1827_v40 = vmul.f32 %v2527_v23, %v4050_v27  ;;  %v2333_v5 = vld [vmem:[%s4011_s8 + $0x13] ss:$0 sm:$0xff]  ;;  %v2334_v43 = vld [vmem:[%s4012_s9] ss:$0 sm:$0xff]  ;;  %v2335_v24 = vld [vmem:[%s4012_s9 + $0x1] ss:$0 sm:$0xff]  ;;  %v1951_v10 = vmul.f32 %v2317_v26, %v1811_v17 }
 0x4d4   :  { %v2336_v23 = vld [vmem:[%s4012_s9 + $0x2] ss:$0 sm:$0xff]  ;;  %v2337_v53 = vld [vmem:[%s4012_s9 + $0x3] ss:$0 sm:$0xff]  ;;  %v2338_v27 = vld [vmem:[%s4012_s9 + $0x4] ss:$0 sm:$0xff]  ;;  %v1952_v58 = vmul.f32 %v2318_v57, %v1812_v45  ;;  %v1953_v7 = vmul.f32 %v2319_v9, %v1813_v47  ;;  %v1954_v1 = vmul.f32 %v2320_v22, %v1814_v4  ;;  %v1955_v21 = vmul.f32 %v2321_v31, %v1815_v35 }
 0x4d5   :  { %v2339_v14 = vld [vmem:[%s4012_s9 + $0x5] ss:$0 sm:$0xff]  ;;  %v2340_v12 = vld [vmem:[%s4012_s9 + $0x6] ss:$0 sm:$0xff]  ;;  %v2341_v48 = vld [vmem:[%s4012_s9 + $0x7] ss:$0 sm:$0xff]  ;;  %v1956_v26 = vmul.f32 %v2322_v55, %v1816_v0  ;;  %v1957_v33 = vmul.f32 %v2323_v49, %v1817_v3  ;;  %v1958_v36 = vmul.f32 %v2324_v2, %v1818_v60  ;;  %v1959_v62 = vmul.f32 %v2325_v13, %v1819_v19 }
 0x4d6   :  { %v2342_v17 = vld [vmem:[%s4012_s9 + $0x8] ss:$0 sm:$0xff]  ;;  %v2343_v57 = vld [vmem:[%s4012_s9 + $0x9] ss:$0 sm:$0xff]  ;;  %v2344_v9 = vld [vmem:[%s4012_s9 + $0xa] ss:$0 sm:$0xff]  ;;  %v1960_v22 = vmul.f32 %v2326_v15, %v1820_v52  ;;  %v1961_v31 = vmul.f32 %v2327_v44, %v1821_v28  ;;  %v1962_v45 = vmul.f32 %v2328_v6, %v1822_v20  ;;  %v1963_v47 = vmul.f32 %v2329_v59, %v1823_v54 }
 0x4d7   :  { %v2345_v4 = vld [vmem:[%s4012_s9 + $0xb] ss:$0 sm:$0xff]  ;;  %v2346_v35 = vld [vmem:[%s4012_s9 + $0xc] ss:$0 sm:$0xff]  ;;  %v2347_v55 = vld [vmem:[%s4012_s9 + $0xd] ss:$0 sm:$0xff]  ;;  %v1964_v49 = vmul.f32 %v2330_v8, %v1824_v38  ;;  %v1965_v2 = vmul.f32 %v2331_v16, %v1825_v42  ;;  %v1966_v13 = vmul.f32 %v2332_v46, %v1826_v11  ;;  %v1967_v0 = vmul.f32 %v2333_v5, %v1827_v40 }
 0x4d8   :  { %v2348_v3 = vld [vmem:[%s4012_s9 + $0xe] ss:$0 sm:$0xff]  ;;  %v2349_v60 = vld [vmem:[%s4012_s9 + $0xf] ss:$0 sm:$0xff]  ;;  %v2350_v19 = vld [vmem:[%s4012_s9 + $0x10] ss:$0 sm:$0xff]  ;;  %v2088_v15 = vadd.f32 %v2334_v43, %v1948_v56  ;;  %v2089_v44 = vadd.f32 %v2335_v24, %v1949_v39  ;;  %v2090_v6 = vadd.f32 %v2336_v23, %v1950_v50  ;;  %v2091_v59 = vadd.f32 %v2337_v53, %v1951_v10 }
 0x4d9   :  { %v2351_v5 = vld [vmem:[%s4012_s9 + $0x11] ss:$0 sm:$0xff]  ;;  %v2352_v52 = vld [vmem:[%s4012_s9 + $0x12] ss:$0 sm:$0xff]  ;;  %v2353_v28 = vld [vmem:[%s4012_s9 + $0x13] ss:$0 sm:$0xff]  ;;  %v2092_v20 = vadd.f32 %v2338_v27, %v1952_v58  ;;  %v2093_v54 = vadd.f32 %v2339_v14, %v1953_v7  ;;  %v2094_v8 = vadd.f32 %v2340_v12, %v1954_v1  ;;  %v2095_v16 = vadd.f32 %v2341_v48, %v1955_v21 }
 0x4da   :  { %v2096_v56 = vadd.f32 %v2342_v17, %v1956_v26  ;;  %v2097_v24 = vadd.f32 %v2343_v57, %v1957_v33  ;;  %v2098_v50 = vadd.f32 %v2344_v9, %v1958_v36  ;;  %v2099_v43 = vadd.f32 %v2345_v4, %v1959_v62  ;;  %v4051_v26 = vld [vmem:[#allocation11_spill] sm:$0xff]  ;;  %v4052_v33 = vld [vmem:[#allocation12_spill] sm:$0xff]  ;;  %v4053_v36 = vld [vmem:[#allocation13_spill] sm:$0xff] }
 0x4db   :  { %v2100_v46 = vadd.f32 %v2346_v35, %v1960_v22  ;;  %v2101_v38 = vadd.f32 %v2347_v55, %v1961_v31  ;;  %v2102_v42 = vadd.f32 %v2348_v3, %v1962_v45  ;;  %v2103_v11 = vadd.f32 %v2349_v60, %v1963_v47  ;;  %v4054_v62 = vld [vmem:[#allocation14_spill] sm:$0xff]  ;;  %v4055_v17 = vld [vmem:[#allocation15_spill] sm:$0xff]  ;;  %v4056_v57 = vld [vmem:[#allocation16_spill] sm:$0xff] }
 0x4dc   :  { %v2104_v40 = vadd.f32 %v2350_v19, %v1964_v49  ;;  %v2105_v39 = vadd.f32 %v2351_v5, %v1965_v2  ;;  %v2106_v10 = vadd.f32 %v2352_v52, %v1966_v13  ;;  %v2107_v23 = vadd.f32 %v2353_v28, %v1967_v0  ;;  %v4057_v9 = vld [vmem:[#allocation17_spill] sm:$0xff]  ;;  %v4058_v22 = vld [vmem:[#allocation18_spill] sm:$0xff]  ;;  %v4059_v31 = vld [vmem:[#allocation19_spill] sm:$0xff] }
 0x4dd   :  { %v2108_v53 = vadd.f32 %v2088_v15, %v3714_v61  ;;  %v2109_v18 = vadd.f32 %v2089_v44, %v3716_v25  ;;  %v2110_v7 = vadd.f32 %v2090_v6, %v3718_v30  ;;  %v2111_v21 = vadd.f32 %v2091_v59, %v3720_v32  ;;  %v4060_v45 = vld [vmem:[#allocation20_spill] sm:$0xff] }
 0x4de   :  { %v2112_v1 = vadd.f32 %v2092_v20, %v3731_v63  ;;  %v2113_v58 = vadd.f32 %v2093_v54, %v3733_v37  ;;  %v2114_v27 = vadd.f32 %v2094_v8, %v3735_v29  ;;  %v2115_v14 = vadd.f32 %v2095_v16, %v3737_v51 }
 0x4df   :  { %v2116_v12 = vadd.f32 %v2096_v56, %v3739_v34  ;;  %v2117_v48 = vadd.f32 %v2097_v24, %v3741_v41  ;;  %v2118_v61 = vadd.f32 %v2098_v50, %v4051_v26  ;;  %v2119_v25 = vadd.f32 %v2099_v43, %v4052_v33 }
 0x4e0   :  { %v2120_v30 = vadd.f32 %v2100_v46, %v4053_v36  ;;  %v2121_v32 = vadd.f32 %v2101_v38, %v4054_v62  ;;  %v2122_v63 = vadd.f32 %v2102_v42, %v4055_v17  ;;  %v2123_v37 = vadd.f32 %v2103_v11, %v4056_v57 }
 0x4e1   :  { %v2124_v29 = vadd.f32 %v2104_v40, %v4057_v9  ;;  %v2125_v51 = vadd.f32 %v2105_v39, %v4058_v22  ;;  %v2126_v34 = vadd.f32 %v2106_v10, %v4059_v31  ;;  %v2127_v41 = vadd.f32 %v2107_v23, %v4060_v45 }
 0x4e2   :  { %v2128_v47 = vmax.f32 %v2108_v53, 0.0  ;;  %v2129_v4 = vmax.f32 %v2109_v18, 0.0  ;;  %v2130_v35 = vmax.f32 %v2110_v7, 0.0  ;;  %v2131_v55 = vmax.f32 %v2111_v21, 0.0 }
 0x4e3   :  { %v2132_v49 = vmax.f32 %v2112_v1, 0.0  ;;  %v2133_v2 = vmax.f32 %v2113_v58, 0.0  ;;  %v2134_v13 = vmax.f32 %v2114_v27, 0.0  ;;  %v2135_v0 = vmax.f32 %v2115_v14, 0.0 }
 0x4e4   :  { %v2136_v3 = vmax.f32 %v2116_v12, 0.0  ;;  %v2137_v60 = vmax.f32 %v2117_v48, 0.0  ;;  %v2138_v19 = vmax.f32 %v2118_v61, 0.0  ;;  %v2139_v15 = vmax.f32 %v2119_v25, 0.0  ;;  %2148 = vst.msk [vmem:[%s4013_s10] sm:$0xff] %vm326_vm2, %v2128_v47  ;;  %2149 = vst.msk [vmem:[%s4013_s10 + $0x8] sm:$0xff] %vm326_vm2, %v2129_v4 }
 0x4e5   :  { %2150 = vst.msk [vmem:[%s4013_s10 + $0x10] sm:$0xff] %vm326_vm2, %v2130_v35  ;;  %2151 = vst.msk [vmem:[%s4013_s10 + $0x18] sm:$0xff] %vm326_vm2, %v2131_v55  ;;  %v2140_v18 = vmax.f32 %v2120_v30, 0.0  ;;  %v2141_v44 = vmax.f32 %v2121_v32, 0.0  ;;  %v2142_v6 = vmax.f32 %v2122_v63, 0.0  ;;  %v2143_v59 = vmax.f32 %v2123_v37, 0.0 }
 0x4e6   :  { %2152 = vst.msk [vmem:[%s4013_s10 + $0x20] sm:$0xff] %vm326_vm2, %v2132_v49  ;;  %2153 = vst.msk [vmem:[%s4013_s10 + $0x28] sm:$0xff] %vm326_vm2, %v2133_v2  ;;  %v2144_v5 = vmax.f32 %v2124_v29, 0.0  ;;  %v2145_v52 = vmax.f32 %v2125_v51, 0.0  ;;  %v2146_v28 = vmax.f32 %v2126_v34, 0.0  ;;  %v2147_v20 = vmax.f32 %v2127_v41, 0.0 }
 0x4e7   :  { %2154 = vst.msk [vmem:[%s4013_s10 + $0x30] sm:$0xff] %vm326_vm2, %v2134_v13  ;;  %2155 = vst.msk [vmem:[%s4013_s10 + $0x38] sm:$0xff] %vm326_vm2, %v2135_v0 }
 0x4e8   :  { %2156 = vst.msk [vmem:[%s4013_s10 + $0x40] sm:$0xff] %vm326_vm2, %v2136_v3  ;;  %2157 = vst.msk [vmem:[%s4013_s10 + $0x48] sm:$0xff] %vm326_vm2, %v2137_v60 }
 0x4e9   :  { %2158 = vst.msk [vmem:[%s4013_s10 + $0x50] sm:$0xff] %vm326_vm2, %v2138_v19  ;;  %2159 = vst.msk [vmem:[%s4013_s10 + $0x58] sm:$0xff] %vm326_vm2, %v2139_v15 }
 0x4ea   :  { %2160 = vst.msk [vmem:[%s4013_s10 + $0x60] sm:$0xff] %vm326_vm2, %v2140_v18  ;;  %2161 = vst.msk [vmem:[%s4013_s10 + $0x68] sm:$0xff] %vm326_vm2, %v2141_v44 }
 0x4eb   :  { %2162 = vst.msk [vmem:[%s4013_s10 + $0x70] sm:$0xff] %vm326_vm2, %v2142_v6  ;;  %2163 = vst.msk [vmem:[%s4013_s10 + $0x78] sm:$0xff] %vm326_vm2, %v2143_v59 }
 0x4ec   :  { %2164 = vst.msk [vmem:[%s4013_s10 + $0x80] sm:$0xff] %vm326_vm2, %v2144_v5  ;;  %2165 = vst.msk [vmem:[%s4013_s10 + $0x88] sm:$0xff] %vm326_vm2, %v2145_v52 }
 0x4ed   :  { %2166 = vst.msk [vmem:[%s4013_s10 + $0x90] sm:$0xff] %vm326_vm2, %v2146_v28  ;;  %2167 = vst.msk [vmem:[%s4013_s10 + $0x98] sm:$0xff] %vm326_vm2, %v2147_v20 }

</bundles_post_ra>
